<compile_context>
chip_gen: v6e
topology: v6e:2x2x1
jax: 0.10.0
libtpu: 0.0.40
codegen_flags: <defaults>
</compile_context>

<pallas_src>
import numpy as np
import jax
import jax.numpy as jnp
from jax import lax
from jax.experimental import pallas as pl
from jax.experimental.pallas import tpu as pltpu


def _patch_finder_kernel(start_ref,     # (BT, 1)        int32  start indices
                         x_ref,         # (3, BT, N)     f32    coord-major points
                         centers_ref,   # (3, BT, GP)    f32    out
                         patches_ref,   # (K, 3, BT, GP) f32    out (centered)
                         d_scr):        # (BT, G, N)     f32    VMEM scratch (read-only in kNN loop)
    BT, N = x_ref.shape[1], x_ref.shape[2]
    GP = centers_ref.shape[2]           # lane-padded number of patches
    G = d_scr.shape[1]                  # true number of patches
    K = patches_ref.shape[0]

    x3 = x_ref[...]                     # (3, BT, N), hoisted once
    x0, x1, x2 = x3[0], x3[1], x3[2]    # (BT, N) lane-dense coordinate rows

    iota_n = lax.broadcasted_iota(jnp.int32, (BT, N), 1)
    iota_gp = lax.broadcasted_iota(jnp.int32, (1, GP), 1)

    # ---------------- Farthest Point Sampling (G serial steps) --------------
    def fps_body(k, carry):
        cur, min_d, cx, cy, cz = carry
        oh = iota_n == cur                                       # (BT, N) one-hot row
        # single fused 3-row gather via masked select (robust to inf/NaN coords)
        p3 = jnp.sum(jnp.where(oh[None, :, :], x3, 0.0),
                     axis=2, keepdims=True)                      # (3, BT, 1)
        px, py, pz = p3[0], p3[1], p3[2]                         # (BT, 1)
        # record center k into the lane-dense (BT, GP) accumulators
        gsel = iota_gp == k                                      # (1, GP)
        cx = jnp.where(gsel, px, cx)
        cy = jnp.where(gsel, py, cy)
        cz = jnp.where(gsel, pz, cz)
        # squared distances from current point to all points
        sq = (x3 - p3) ** 2                                      # (3, BT, N)
        min_d = jnp.minimum(min_d, sq[0] + sq[1] + sq[2])
        # row-wise argmax, first-occurrence tie-break
        mx = jnp.max(min_d, axis=1, keepdims=True)               # (BT, 1)
        nxt = jnp.min(jnp.where(min_d == mx, iota_n, N),
                      axis=1, keepdims=True)
        return (nxt.astype(jnp.int32), min_d, cx, cy, cz)

    init = (start_ref[...],                                      # (BT, 1) int32
            jnp.full((BT, N), jnp.inf, dtype=jnp.float32),
            jnp.zeros((BT, GP), jnp.float32),
            jnp.zeros((BT, GP), jnp.float32),
            jnp.zeros((BT, GP), jnp.float32))
    _, _, cx, cy, cz = lax.fori_loop(0, G, fps_body, init)

    # single lane-dense (3, BT, GP) center store
    centers_ref[...] = jnp.concatenate([cx[None], cy[None], cz[None]], axis=0)

    # ---------------- kNN grouping: K nearest points per center -------------
    cxg, cyg, czg = cx[:, :G], cy[:, :G], cz[:, :G]              # (BT, G) true-G centers
    x0b, x1b, x2b = x0[:, None, :], x1[:, None, :], x2[:, None, :]   # (BT, 1, N) hoisted
    # distance matrix written ONCE into VMEM scratch; read-only inside the loop
    d_scr[...] = ((cxg[:, :, None] - x0b) ** 2
                  + (cyg[:, :, None] - x1b) ** 2
                  + (czg[:, :, None] - x2b) ** 2)                # (BT, G, N)

    # (1,1,N) iota broadcast inside the compares -- never materialized at (BT,G,N)
    iota_n1 = lax.broadcasted_iota(jnp.int32, (1, 1, N), 2)

    if GP > G:
        # make the lane-pad region of the output deterministic (sliced off in wrapper)
        patches_ref[...] = jnp.zeros_like(patches_ref)

    def knn_body(k, carry):
        d_last, i_last = carry                                   # (BT, G, 1) lexicographic threshold
        D = d_scr[...]                                           # read-only, no rewrite
        allowed = (D > d_last) | ((D == d_last) & (iota_n1 > i_last))
        Dm = jnp.where(allowed, D, jnp.inf)
        dmin = jnp.min(Dm, axis=2, keepdims=True)                # (BT, G, 1)
        sel = jnp.min(jnp.where(Dm == dmin, iota_n1, N),
                      axis=2, keepdims=True)                     # first index attaining dmin
        ohb = iota_n1 == sel                                     # (BT, G, N) exact one-hot
        sx = jnp.sum(jnp.where(ohb, x0b, 0.0), axis=2)           # (BT, G) masked-select gather
        sy = jnp.sum(jnp.where(ohb, x1b, 0.0), axis=2)
        sz = jnp.sum(jnp.where(ohb, x2b, 0.0), axis=2)
        slab = jnp.concatenate([(sx - cxg)[None],
                                (sy - cyg)[None],
                                (sz - czg)[None]], axis=0)       # (3, BT, G) centered
        if GP == G:
            patches_ref[k] = slab                                # fully lane-dense store
        else:
            patches_ref[k, :, :, :G] = slab                      # block stays GP-wide -> dense HBM DMA
        return (dmin, sel)

    lax.fori_loop(0, K, knn_body,
                  (jnp.full((BT, G, 1), -jnp.inf, jnp.float32),
                   jnp.full((BT, G, 1), -1, jnp.int32)))


def _round_up(x, m):
    return ((x + m - 1) // m) * m


def _vmem_bytes(bt, N, G, GP, K):
    f = 4
    inp = 2 * 3 * bt * N * f                      # double-buffered input block
    outs = 2 * (3 + K * 3) * bt * GP * f          # double-buffered output blocks
    dscr = bt * G * N * f                         # read-only distance scratch
    work = 3 * bt * G * N * f                     # kNN loop temporaries (mask / Dm / one-hot)
    return inp + outs + dscr + work


def _choose_batch_tile(B, N, G, GP, K):
    """Largest batch tile (sublane rows / grid step) fitting a conservative VMEM
    budget, shrunk so the grid has >= 2 steps (v7x megacore) without padding
    more batch rows than necessary."""
    budget = 28 * 1024 * 1024
    b8 = _round_up(max(B, 1), 8)
    bt = 32
    while bt > 8 and _vmem_bytes(bt, N, G, GP, K) > budget:
        bt //= 2
    while bt > 8 and bt > b8:
        bt //= 2
    while bt > 8 and (b8 + bt - 1) // bt < 2:
        bt //= 2
    return bt


def patch_finder(xyz, n_patches, patch_size, *, random=True, key=None):
    """Pallas implementation of PatchFinder.forward.

    Args:
      xyz: [B, N, 3] float32 point clouds.
    Returns:
      (patches [1, B, n_patches, patch_size, 3], centers [1, B, n_patches, 3])
    """
    B, N, C = xyz.shape
    assert C == 3
    G, K = n_patches, patch_size
    assert 1 <= K <= N, "patch_size must not exceed the number of points"
    assert G >= 1

    if random:
        assert key is not None
        start = jax.random.randint(key, (B,), 0, N, dtype=jnp.int32)
    else:
        start = jnp.zeros((B,), dtype=jnp.int32)

    GP = _round_up(G, 128)                            # lane-dense output width
    BT = _choose_batch_tile(B, N, G, GP, K)
    grid_steps = max(2, (_round_up(B, 8) + BT - 1) // BT)
    B_pad = grid_steps * BT

    x = xyz.astype(jnp.float32)
    if B_pad != B:
        x = jnp.concatenate([x, jnp.zeros((B_pad - B, N, 3), jnp.float32)], axis=0)
        start = jnp.concatenate([start, jnp.zeros((B_pad - B,), jnp.int32)], axis=0)

    x3 = jnp.transpose(x, (2, 0, 1))                  # (3, B_pad, N) coord-major
    start_v = start.reshape(B_pad, 1)

    vmem_limit = int(min(max(2 * _vmem_bytes(BT, N, G, GP, K), 32 * 1024 * 1024),
                         48 * 1024 * 1024))

    centers3, patches3 = pl.pallas_call(
        _patch_finder_kernel,
        out_shape=(
            jax.ShapeDtypeStruct((3, B_pad, GP), jnp.float32),
            jax.ShapeDtypeStruct((K, 3, B_pad, GP), jnp.float32),
        ),
        grid_spec=pltpu.PrefetchScalarGridSpec(
            num_scalar_prefetch=0,
            grid=(B_pad // BT,),
            in_specs=[
                pl.BlockSpec((BT, 1), lambda t: (t, 0)),
                pl.BlockSpec((3, BT, N), lambda t: (0, t, 0)),
            ],
            out_specs=[
                pl.BlockSpec((3, BT, GP), lambda t: (0, t, 0)),
                pl.BlockSpec((K, 3, BT, GP), lambda t: (0, 0, t, 0)),
            ],
            scratch_shapes=[pltpu.VMEM((BT, G, N), jnp.float32)],
        ),
        compiler_params=pltpu.CompilerParams(
            dimension_semantics=("parallel",),        # batch tiles are independent
            vmem_limit_bytes=vmem_limit),
    )(start_v, x3)

    centers = jnp.transpose(centers3, (1, 2, 0))[:B, :G]        # (B, G, 3)
    patches = jnp.transpose(patches3, (2, 3, 0, 1))[:B, :G]     # (B, G, K, 3)
    # PatchedCloud(patches.unsqueeze(0), centers.unsqueeze(0))
    return patches[None], centers[None]


def ref_patch_finder(xyz, start, n_patches, patch_size):
    """Pure-JAX reference (FPS + kNN, same tie-breaking)."""
    B, N, _ = xyz.shape
    G, K = n_patches, patch_size

    def one(x, s):
        cur = s
        min_d = jnp.full((N,), jnp.inf, dtype=jnp.float32)
        centers = []
        for _ in range(G):
            p = x[cur]
            centers.append(p)
            d = ((x[:, 0] - p[0]) ** 2 + (x[:, 1] - p[1]) ** 2
                 + (x[:, 2] - p[2]) ** 2)
            min_d = jnp.minimum(min_d, d)
            cur = jnp.argmax(min_d)
        centers = jnp.stack(centers)                              # (G, 3)
        D = ((centers[:, 0:1] - x[None, :, 0].reshape(1, N)) ** 2
             + (centers[:, 1:2] - x[None, :, 1].reshape(1, N)) ** 2
             + (centers[:, 2:3] - x[None, :, 2].reshape(1, N)) ** 2)
        idx = jnp.argsort(D, axis=1)[:, :K]                       # (G, K), stable
        patches = x[idx] - centers[:, None, :]                    # (G, K, 3)
        return patches, centers

    ps, cs = [], []
    for b in range(B):
        p, c = one(xyz[b], start[b])
        ps.append(p)
        cs.append(c)
    return jnp.stack(ps)[None], jnp.stack(cs)[None]


if __name__ == "__main__":
    B, N = 2, 128
    n_patches, patch_size = 8, 8

    key = jax.random.PRNGKey(0)
    k_pts, k_start = jax.random.split(key)
    xyz = jax.random.uniform(k_pts, (B, N, 3), dtype=jnp.float32)

    patches, centers = patch_finder(xyz, n_patches, patch_size,
                                    random=True, key=k_start)
    patches = jax.block_until_ready(patches)
    centers = jax.block_until_ready(centers)

    assert patches.shape == (1, B, n_patches, patch_size, 3)
    assert centers.shape == (1, B, n_patches, 3)

    # verify against pure-JAX reference (same random start indices)
    start = jax.random.randint(k_start, (B,), 0, N, dtype=jnp.int32)
    ref_patches, ref_centers = ref_patch_finder(xyz, start, n_patches, patch_size)
    np.testing.assert_allclose(np.asarray(centers), np.asarray(ref_centers),
                               atol=1e-5, rtol=1e-5)
    np.testing.assert_allclose(np.asarray(patches), np.asarray(ref_patches),
                               atol=1e-5, rtol=1e-5)

    print("KERNEL_OK")
</pallas_src>

<mosaic_0001>
module attributes {stable_mosaic.version = 11 : i64} {
  func.func @_patch_finder_kernel(%arg0: i32, %arg1: memref<8x1xi32, #tpu.memory_space<vmem>>, %arg2: memref<3x8x128xf32, #tpu.memory_space<vmem>>, %arg3: memref<3x8x128xf32, #tpu.memory_space<vmem>>, %arg4: memref<8x3x8x128xf32, #tpu.memory_space<vmem>>, %arg5: memref<8x8x128xf32, #tpu.memory_space<vmem>>) attributes {dimension_semantics = [#tpu.dimension_semantics<parallel>], iteration_bounds = array<i64: 2>, scalar_prefetch = 0 : i64, scratch_operands = 1 : i64, tpu.core_type = #tpu.core_type<tc>, window_params = [{transform_indices = @transform_0, window_bounds = array<i64: 8, 1>}, {transform_indices = @transform_1, window_bounds = array<i64: 3, 8, 128>}, {transform_indices = @transform_2, window_bounds = array<i64: 3, 8, 128>}, {transform_indices = @transform_3, window_bounds = array<i64: 8, 3, 8, 128>}]} {
    %c0 = arith.constant 0 : index
    %c0_0 = arith.constant 0 : index
    %c0_1 = arith.constant 0 : index
    %0 = vector.load %arg2[%c0, %c0_0, %c0_1] : memref<3x8x128xf32, #tpu.memory_space<vmem>>, vector<3x8x128xf32>
    %1 = vector.extract_strided_slice %0 {offsets = [0, 0, 0], sizes = [1, 8, 128], strides = [1, 1, 1]} : vector<3x8x128xf32> to vector<1x8x128xf32>
    %2 = vector.shape_cast %1 : vector<1x8x128xf32> to vector<8x128xf32>
    %3 = vector.extract_strided_slice %0 {offsets = [1, 0, 0], sizes = [1, 8, 128], strides = [1, 1, 1]} : vector<3x8x128xf32> to vector<1x8x128xf32>
    %4 = vector.shape_cast %3 : vector<1x8x128xf32> to vector<8x128xf32>
    %5 = vector.extract_strided_slice %0 {offsets = [2, 0, 0], sizes = [1, 8, 128], strides = [1, 1, 1]} : vector<3x8x128xf32> to vector<1x8x128xf32>
    %6 = vector.shape_cast %5 : vector<1x8x128xf32> to vector<8x128xf32>
    %7 = tpu.iota {dimensions = array<i32: 1>} : vector<8x128xi32>
    %8 = tpu.iota {dimensions = array<i32: 1>} : vector<1x128xi32>
    %c0_2 = arith.constant 0 : index
    %c0_3 = arith.constant 0 : index
    %9 = vector.load %arg1[%c0_2, %c0_3] : memref<8x1xi32, #tpu.memory_space<vmem>>, vector<8x1xi32>
    %cst = arith.constant 0x7F800000 : f32
    %10 = vector.broadcast %cst : f32 to vector<8x128xf32>
    %cst_4 = arith.constant 0.000000e+00 : f32
    %11 = vector.broadcast %cst_4 : f32 to vector<8x128xf32>
    %cst_5 = arith.constant 0.000000e+00 : f32
    %12 = vector.broadcast %cst_5 : f32 to vector<8x128xf32>
    %cst_6 = arith.constant 0.000000e+00 : f32
    %13 = vector.broadcast %cst_6 : f32 to vector<8x128xf32>
    %c0_i32 = arith.constant 0 : i32
    %c8_i32 = arith.constant 8 : i32
    %14 = arith.addi %c0_i32, %c8_i32 : i32
    %c1_i32 = arith.constant 1 : i32
    %15:5 = scf.for %arg6 = %c0_i32 to %14 step %c1_i32 iter_args(%arg7 = %9, %arg8 = %10, %arg9 = %11, %arg10 = %12, %arg11 = %13) -> (vector<8x1xi32>, vector<8x128xf32>, vector<8x128xf32>, vector<8x128xf32>, vector<8x128xf32>)  : i32 {
      %52 = vector.broadcast %arg7 : vector<8x1xi32> to vector<8x128xi32>
      %53 = arith.cmpi eq, %7, %52 : vector<8x128xi32>
      %54 = vector.shape_cast %53 : vector<8x128xi1> to vector<1x8x128xi1>
      %cst_24 = arith.constant 0.000000e+00 : f32
      %55 = vector.shape_cast %54 : vector<1x8x128xi1> to vector<1x8x128xi1>
      %56 = vector.broadcast %55 : vector<1x8x128xi1> to vector<3x8x128xi1>
      %57 = vector.broadcast %cst_24 : f32 to vector<3x8x128xf32>
      %58 = arith.select %56, %0, %57 : vector<3x8x128xi1>, vector<3x8x128xf32>
      %cst_25 = arith.constant dense<0.000000e+00> : vector<3x8xf32>
      %59 = vector.multi_reduction <add>, %58, %cst_25 [2] : vector<3x8x128xf32> to vector<3x8xf32>
      %60 = vector.shape_cast %59 : vector<3x8xf32> to vector<3x8x1xf32>
      %61 = vector.extract_strided_slice %60 {offsets = [0, 0, 0], sizes = [1, 8, 1], strides = [1, 1, 1]} : vector<3x8x1xf32> to vector<1x8x1xf32>
      %62 = vector.shape_cast %61 : vector<1x8x1xf32> to vector<8x1xf32>
      %63 = vector.extract_strided_slice %60 {offsets = [1, 0, 0], sizes = [1, 8, 1], strides = [1, 1, 1]} : vector<3x8x1xf32> to vector<1x8x1xf32>
      %64 = vector.shape_cast %63 : vector<1x8x1xf32> to vector<8x1xf32>
      %65 = vector.extract_strided_slice %60 {offsets = [2, 0, 0], sizes = [1, 8, 1], strides = [1, 1, 1]} : vector<3x8x1xf32> to vector<1x8x1xf32>
      %66 = vector.shape_cast %65 : vector<1x8x1xf32> to vector<8x1xf32>
      %67 = vector.broadcast %arg6 : i32 to vector<1x128xi32>
      %68 = arith.cmpi eq, %8, %67 : vector<1x128xi32>
      %69 = vector.shape_cast %68 : vector<1x128xi1> to vector<1x128xi1>
      %70 = vector.broadcast %69 : vector<1x128xi1> to vector<8x128xi1>
      %71 = vector.shape_cast %62 : vector<8x1xf32> to vector<8x1xf32>
      %72 = vector.broadcast %71 : vector<8x1xf32> to vector<8x128xf32>
      %73 = arith.select %70, %72, %arg9 : vector<8x128xi1>, vector<8x128xf32>
      %74 = vector.shape_cast %68 : vector<1x128xi1> to vector<1x128xi1>
      %75 = vector.broadcast %74 : vector<1x128xi1> to vector<8x128xi1>
      %76 = vector.shape_cast %64 : vector<8x1xf32> to vector<8x1xf32>
      %77 = vector.broadcast %76 : vector<8x1xf32> to vector<8x128xf32>
      %78 = arith.select %75, %77, %arg10 : vector<8x128xi1>, vector<8x128xf32>
      %79 = vector.shape_cast %68 : vector<1x128xi1> to vector<1x128xi1>
      %80 = vector.broadcast %79 : vector<1x128xi1> to vector<8x128xi1>
      %81 = vector.shape_cast %66 : vector<8x1xf32> to vector<8x1xf32>
      %82 = vector.broadcast %81 : vector<8x1xf32> to vector<8x128xf32>
      %83 = arith.select %80, %82, %arg11 : vector<8x128xi1>, vector<8x128xf32>
      %84 = vector.broadcast %60 : vector<3x8x1xf32> to vector<3x8x128xf32>
      %85 = arith.subf %0, %84 : vector<3x8x128xf32>
      %86 = arith.mulf %85, %85 : vector<3x8x128xf32>
      %87 = vector.extract_strided_slice %86 {offsets = [0, 0, 0], sizes = [1, 8, 128], strides = [1, 1, 1]} : vector<3x8x128xf32> to vector<1x8x128xf32>
      %88 = vector.shape_cast %87 : vector<1x8x128xf32> to vector<8x128xf32>
      %89 = vector.extract_strided_slice %86 {offsets = [1, 0, 0], sizes = [1, 8, 128], strides = [1, 1, 1]} : vector<3x8x128xf32> to vector<1x8x128xf32>
      %90 = vector.shape_cast %89 : vector<1x8x128xf32> to vector<8x128xf32>
      %91 = arith.addf %88, %90 : vector<8x128xf32>
      %92 = vector.extract_strided_slice %86 {offsets = [2, 0, 0], sizes = [1, 8, 128], strides = [1, 1, 1]} : vector<3x8x128xf32> to vector<1x8x128xf32>
      %93 = vector.shape_cast %92 : vector<1x8x128xf32> to vector<8x128xf32>
      %94 = arith.addf %91, %93 : vector<8x128xf32>
      %95 = arith.minimumf %arg8, %94 : vector<8x128xf32>
      %cst_26 = arith.constant dense<0xFF800000> : vector<8xf32>
      %96 = vector.multi_reduction <maximumf>, %95, %cst_26 [1] : vector<8x128xf32> to vector<8xf32>
      %97 = vector.shape_cast %96 : vector<8xf32> to vector<8x1xf32>
      %98 = vector.broadcast %97 : vector<8x1xf32> to vector<8x128xf32>
      %99 = arith.cmpf oeq, %95, %98 : vector<8x128xf32>
      %c128_i32 = arith.constant 128 : i32
      %100 = vector.broadcast %c128_i32 : i32 to vector<8x128xi32>
      %101 = arith.select %99, %7, %100 : vector<8x128xi1>, vector<8x128xi32>
      %cst_27 = arith.constant dense<2147483647> : vector<8xi32>
      %102 = vector.multi_reduction <minsi>, %101, %cst_27 [1] : vector<8x128xi32> to vector<8xi32>
      %103 = vector.shape_cast %102 : vector<8xi32> to vector<8x1xi32>
      scf.yield %103, %95, %73, %78, %83 : vector<8x1xi32>, vector<8x128xf32>, vector<8x128xf32>, vector<8x128xf32>, vector<8x128xf32>
    }
    %c8_i32_7 = arith.constant 8 : i32
    %16 = vector.shape_cast %15#2 : vector<8x128xf32> to vector<1x8x128xf32>
    %17 = vector.shape_cast %15#3 : vector<8x128xf32> to vector<1x8x128xf32>
    %18 = vector.shape_cast %15#4 : vector<8x128xf32> to vector<1x8x128xf32>
    %19 = tpu.concatenate %16, %17, %18 in 0 : vector<1x8x128xf32>, vector<1x8x128xf32>, vector<1x8x128xf32> -> vector<3x8x128xf32>
    %c0_8 = arith.constant 0 : index
    %c0_9 = arith.constant 0 : index
    %c0_10 = arith.constant 0 : index
    %20 = vector.load %arg3[%c0_8, %c0_9, %c0_10] : memref<3x8x128xf32, #tpu.memory_space<vmem>>, vector<3x8x128xf32>
    tpu.vector_store %arg3[%c0_8, %c0_9, %c0_10], %19 {strides = array<i32>} : memref<3x8x128xf32, #tpu.memory_space<vmem>>, vector<3x8x128xf32>,
    %21 = vector.extract_strided_slice %15#2 {offsets = [0, 0], sizes = [8, 8], strides = [1, 1]} : vector<8x128xf32> to vector<8x8xf32>
    %22 = vector.extract_strided_slice %15#3 {offsets = [0, 0], sizes = [8, 8], strides = [1, 1]} : vector<8x128xf32> to vector<8x8xf32>
    %23 = vector.extract_strided_slice %15#4 {offsets = [0, 0], sizes = [8, 8], strides = [1, 1]} : vector<8x128xf32> to vector<8x8xf32>
    %24 = vector.shape_cast %2 : vector<8x128xf32> to vector<8x1x128xf32>
    %25 = vector.shape_cast %4 : vector<8x128xf32> to vector<8x1x128xf32>
    %26 = vector.shape_cast %6 : vector<8x128xf32> to vector<8x1x128xf32>
    %27 = vector.shape_cast %21 : vector<8x8xf32> to vector<8x8x1xf32>
    %28 = vector.broadcast %27 : vector<8x8x1xf32> to vector<8x8x128xf32>
    %29 = vector.broadcast %24 : vector<8x1x128xf32> to vector<8x8x128xf32>
    %30 = arith.subf %28, %29 : vector<8x8x128xf32>
    %31 = arith.mulf %30, %30 : vector<8x8x128xf32>
    %32 = vector.shape_cast %22 : vector<8x8xf32> to vector<8x8x1xf32>
    %33 = vector.broadcast %32 : vector<8x8x1xf32> to vector<8x8x128xf32>
    %34 = vector.broadcast %25 : vector<8x1x128xf32> to vector<8x8x128xf32>
    %35 = arith.subf %33, %34 : vector<8x8x128xf32>
    %36 = arith.mulf %35, %35 : vector<8x8x128xf32>
    %37 = arith.addf %31, %36 : vector<8x8x128xf32>
    %38 = vector.shape_cast %23 : vector<8x8xf32> to vector<8x8x1xf32>
    %39 = vector.broadcast %38 : vector<8x8x1xf32> to vector<8x8x128xf32>
    %40 = vector.broadcast %26 : vector<8x1x128xf32> to vector<8x8x128xf32>
    %41 = arith.subf %39, %40 : vector<8x8x128xf32>
    %42 = arith.mulf %41, %41 : vector<8x8x128xf32>
    %43 = arith.addf %37, %42 : vector<8x8x128xf32>
    %c0_11 = arith.constant 0 : index
    %c0_12 = arith.constant 0 : index
    %c0_13 = arith.constant 0 : index
    %44 = vector.load %arg5[%c0_11, %c0_12, %c0_13] : memref<8x8x128xf32, #tpu.memory_space<vmem>>, vector<8x8x128xf32>
    tpu.vector_store %arg5[%c0_11, %c0_12, %c0_13], %43 {strides = array<i32>} : memref<8x8x128xf32, #tpu.memory_space<vmem>>, vector<8x8x128xf32>,
    %45 = tpu.iota {dimensions = array<i32: 2>} : vector<1x1x128xi32>
    %cst_14 = arith.constant 0.000000e+00 : f32
    %46 = vector.broadcast %cst_14 : f32 to vector<8x3x8x128xf32>
    %c0_15 = arith.constant 0 : index
    %c0_16 = arith.constant 0 : index
    %c0_17 = arith.constant 0 : index
    %c0_18 = arith.constant 0 : index
    %47 = vector.load %arg4[%c0_15, %c0_16, %c0_17, %c0_18] : memref<8x3x8x128xf32, #tpu.memory_space<vmem>>, vector<8x3x8x128xf32>
    tpu.vector_store %arg4[%c0_15, %c0_16, %c0_17, %c0_18], %46 {strides = array<i32>} : memref<8x3x8x128xf32, #tpu.memory_space<vmem>>, vector<8x3x8x128xf32>,
    %cst_19 = arith.constant 0xFF800000 : f32
    %48 = vector.broadcast %cst_19 : f32 to vector<8x8x1xf32>
    %c-1_i32 = arith.constant -1 : i32
    %49 = vector.broadcast %c-1_i32 : i32 to vector<8x8x1xi32>
    %c0_i32_20 = arith.constant 0 : i32
    %c8_i32_21 = arith.constant 8 : i32
    %50 = arith.addi %c0_i32_20, %c8_i32_21 : i32
    %c1_i32_22 = arith.constant 1 : i32
    %51:2 = scf.for %arg6 = %c0_i32_20 to %50 step %c1_i32_22 iter_args(%arg7 = %48, %arg8 = %49) -> (vector<8x8x1xf32>, vector<8x8x1xi32>)  : i32 {
      %c0_24 = arith.constant 0 : index
      %c0_25 = arith.constant 0 : index
      %c0_26 = arith.constant 0 : index
      %52 = vector.load %arg5[%c0_24, %c0_25, %c0_26] : memref<8x8x128xf32, #tpu.memory_space<vmem>>, vector<8x8x128xf32>
      %53 = vector.broadcast %arg7 : vector<8x8x1xf32> to vector<8x8x128xf32>
      %54 = arith.cmpf ogt, %52, %53 : vector<8x8x128xf32>
      %55 = vector.broadcast %arg7 : vector<8x8x1xf32> to vector<8x8x128xf32>
      %56 = arith.cmpf oeq, %52, %55 : vector<8x8x128xf32>
      %57 = vector.broadcast %45 : vector<1x1x128xi32> to vector<8x8x128xi32>
      %58 = vector.broadcast %arg8 : vector<8x8x1xi32> to vector<8x8x128xi32>
      %59 = arith.cmpi sgt, %57, %58 : vector<8x8x128xi32>
      %60 = arith.andi %56, %59 : vector<8x8x128xi1>
      %61 = arith.ori %54, %60 : vector<8x8x128xi1>
      %cst_27 = arith.constant 0x7F800000 : f32
      %62 = vector.broadcast %cst_27 : f32 to vector<8x8x128xf32>
      %63 = arith.select %61, %52, %62 : vector<8x8x128xi1>, vector<8x8x128xf32>
      %cst_28 = arith.constant dense<0x7F800000> : vector<8x8xf32>
      %64 = vector.multi_reduction <minimumf>, %63, %cst_28 [2] : vector<8x8x128xf32> to vector<8x8xf32>
      %65 = vector.shape_cast %64 : vector<8x8xf32> to vector<8x8x1xf32>
      %66 = vector.broadcast %65 : vector<8x8x1xf32> to vector<8x8x128xf32>
      %67 = arith.cmpf oeq, %63, %66 : vector<8x8x128xf32>
      %c128_i32 = arith.constant 128 : i32
      %68 = vector.shape_cast %45 : vector<1x1x128xi32> to vector<1x1x128xi32>
      %69 = vector.broadcast %68 : vector<1x1x128xi32> to vector<8x8x128xi32>
      %70 = vector.broadcast %c128_i32 : i32 to vector<8x8x128xi32>
      %71 = arith.select %67, %69, %70 : vector<8x8x128xi1>, vector<8x8x128xi32>
      %cst_29 = arith.constant dense<2147483647> : vector<8x8xi32>
      %72 = vector.multi_reduction <minsi>, %71, %cst_29 [2] : vector<8x8x128xi32> to vector<8x8xi32>
      %73 = vector.shape_cast %72 : vector<8x8xi32> to vector<8x8x1xi32>
      %74 = vector.broadcast %45 : vector<1x1x128xi32> to vector<8x8x128xi32>
      %75 = vector.broadcast %73 : vector<8x8x1xi32> to vector<8x8x128xi32>
      %76 = arith.cmpi eq, %74, %75 : vector<8x8x128xi32>
      %cst_30 = arith.constant 0.000000e+00 : f32
      %77 = vector.shape_cast %24 : vector<8x1x128xf32> to vector<8x1x128xf32>
      %78 = vector.broadcast %77 : vector<8x1x128xf32> to vector<8x8x128xf32>
      %79 = vector.broadcast %cst_30 : f32 to vector<8x8x128xf32>
      %80 = arith.select %76, %78, %79 : vector<8x8x128xi1>, vector<8x8x128xf32>
      %cst_31 = arith.constant dense<0.000000e+00> : vector<8x8xf32>
      %81 = vector.multi_reduction <add>, %80, %cst_31 [2] : vector<8x8x128xf32> to vector<8x8xf32>
      %cst_32 = arith.constant 0.000000e+00 : f32
      %82 = vector.shape_cast %25 : vector<8x1x128xf32> to vector<8x1x128xf32>
      %83 = vector.broadcast %82 : vector<8x1x128xf32> to vector<8x8x128xf32>
      %84 = vector.broadcast %cst_32 : f32 to vector<8x8x128xf32>
      %85 = arith.select %76, %83, %84 : vector<8x8x128xi1>, vector<8x8x128xf32>
      %cst_33 = arith.constant dense<0.000000e+00> : vector<8x8xf32>
      %86 = vector.multi_reduction <add>, %85, %cst_33 [2] : vector<8x8x128xf32> to vector<8x8xf32>
      %cst_34 = arith.constant 0.000000e+00 : f32
      %87 = vector.shape_cast %26 : vector<8x1x128xf32> to vector<8x1x128xf32>
      %88 = vector.broadcast %87 : vector<8x1x128xf32> to vector<8x8x128xf32>
      %89 = vector.broadcast %cst_34 : f32 to vector<8x8x128xf32>
      %90 = arith.select %76, %88, %89 : vector<8x8x128xi1>, vector<8x8x128xf32>
      %cst_35 = arith.constant dense<0.000000e+00> : vector<8x8xf32>
      %91 = vector.multi_reduction <add>, %90, %cst_35 [2] : vector<8x8x128xf32> to vector<8x8xf32>
      %92 = arith.subf %81, %21 : vector<8x8xf32>
      %93 = vector.shape_cast %92 : vector<8x8xf32> to vector<1x8x8xf32>
      %94 = arith.subf %86, %22 : vector<8x8xf32>
      %95 = vector.shape_cast %94 : vector<8x8xf32> to vector<1x8x8xf32>
      %96 = arith.subf %91, %23 : vector<8x8xf32>
      %97 = vector.shape_cast %96 : vector<8x8xf32> to vector<1x8x8xf32>
      %98 = tpu.concatenate %93, %95, %97 in 0 : vector<1x8x8xf32>, vector<1x8x8xf32>, vector<1x8x8xf32> -> vector<3x8x8xf32>
      %99 = arith.index_cast %arg6 : i32 to index
      %c0_36 = arith.constant 0 : index
      %c0_37 = arith.constant 0 : index
      %c0_38 = arith.constant 0 : index
      %100 = vector.load %arg4[%99, %c0_36, %c0_37, %c0_38] : memref<8x3x8x128xf32, #tpu.memory_space<vmem>>, vector<1x3x8x8xf32>
      %101 = vector.shape_cast %100 : vector<1x3x8x8xf32> to vector<3x8x8xf32>
      %102 = vector.shape_cast %98 : vector<3x8x8xf32> to vector<1x3x8x8xf32>
      tpu.vector_store %arg4[%99, %c0_36, %c0_37, %c0_38], %102 {strides = array<i32>} : memref<8x3x8x128xf32, #tpu.memory_space<vmem>>, vector<1x3x8x8xf32>,
      scf.yield %65, %73 : vector<8x8x1xf32>, vector<8x8x1xi32>
    }
    %c8_i32_23 = arith.constant 8 : i32
    return
  }
  func.func @transform_0(%arg0: i32) -> (i32, i32) {
    %c0_i32 = arith.constant 0 : i32
    %c0_i32_0 = arith.constant 0 : i32
    return %arg0, %c0_i32 : i32, i32
  }
  func.func @transform_1(%arg0: i32) -> (i32, i32, i32) {
    %c0_i32 = arith.constant 0 : i32
    %c0_i32_0 = arith.constant 0 : i32
    %c0_i32_1 = arith.constant 0 : i32
    return %c0_i32, %arg0, %c0_i32_0 : i32, i32, i32
  }
  func.func @transform_2(%arg0: i32) -> (i32, i32, i32) {
    %c0_i32 = arith.constant 0 : i32
    %c0_i32_0 = arith.constant 0 : i32
    %c0_i32_1 = arith.constant 0 : i32
    return %c0_i32, %arg0, %c0_i32_0 : i32, i32, i32
  }
  func.func @transform_3(%arg0: i32) -> (i32, i32, i32, i32) {
    %c0_i32 = arith.constant 0 : i32
    %c0_i32_0 = arith.constant 0 : i32
    %c0_i32_1 = arith.constant 0 : i32
    %c0_i32_2 = arith.constant 0 : i32
    return %c0_i32, %c0_i32_0, %arg0, %c0_i32_1 : i32, i32, i32, i32
  }
}

</mosaic_0001>

<bundles_post_ra>
// kernel: tpu_custom_call.1
= control target key start
LH: loop header
LB: loop body
LE: loop exit
PB: predicated region body
PF: predicated region fallthrough
CT: control target
= control target key end

     0   :  { %9 = vsyncpa [#allocation4], 0  ;;  %s3490_s0 = inlined_call_operand.vmem [shape: s32[16,1], index: 0, kind: input, shape index: {}]   ;;  %s3491_s1 = inlined_call_operand.hbm [shape: f32[3,16,128], index: 1, kind: input, shape index: {}]   ;;  %s3492_s2 = inlined_call_operand.hbm [shape: f32[3,16,128], index: 2, kind: output, shape index: {0}]   ;;  %s3493_s3 = inlined_call_operand.hbm [shape: f32[8,3,16,128], index: 3, kind: output, shape index: {1}]  }
   0x1   :  { %11 = vsyncpa [#allocation4 + $0x1], 0 }
   0x2   :  { %12 = vsyncpa [#allocation5], 0 }
   0x3   :  { %14 = vsyncpa [#allocation5 + $0x1], 0 }
   0x4   :  { %15 = vsyncpa [#allocation8], 0 }
   0x5   :  { %17 = vsyncpa [#allocation8 + $0x1], 0  ;;  %s2396_s12 = smov 0   ;;  %s2398_s13 = smov 0  }
   0x6   :  { %s2400_s14 = smov 0   ;;  %s2402_s15 = smov 0  }
   0x7 LB: > { %s2417_s16 = sadd.s32 4294967295, %s2269_s15   ;;  %s1794_s17 = sadd.s32 4294967294, %s2269_s15   ;;  %s2269_s15 = sphi %s2402_s15, %s3641_s15   ;;  %s2265_s14 = sphi %s2400_s14, %s3640_s14   ;;  %s2261_s13 = sphi %s2398_s13, %s3639_s13   ;;  %s2257_s12 = sphi %s2396_s12, %s3638_s12  }
   0x8   : > { %s2421_s18 = sadd.s32 1, %s2269_s15   ;;  %s56_s19 = sadd.s32 1, %s2265_s14 }
   0x9   : > { %s53_s20 = ssub.s32 %s2269_s15, %s2421_s18  ;;  %p63_p0 = scmp.ne.s32.totalorder %s2265_s14, %s2261_s13 }
   0xa   : > { %p54_p1 = scmp.eq.s32.totalorder %s53_s20, 0  ;;  %p64_p2 = scmp.eq.s32.totalorder %s2269_s15, 0 }
   0xb   : > { %p69_p3 = scmp.ne.s32.totalorder %s2261_s13, %s2257_s12  ;;  %p70_p4 = scmp.eq.s32.totalorder %s2417_s16, 0 }
   0xc   : > { %s2433_s21 = scalar_select %p54_p1, %s2265_s14, %s56_s19  }
   0xd   : > { %p65_p5 = por %p64_p2, %p63_p0  ;;  %p2435_p6 = por %p70_p4, %p69_p3 }
   0xe   : > { %p93_p7 = scmp.eq.s32.totalorder %s2417_s16, 1  ;;  %p99_p8 = scmp.eq.s32.totalorder %s1794_s17, 1 }
   0xf   : > { %s3534_s22 = scalar_select %p2435_p6, 1, 0 }
  0x10   : > { %p1824_p10 = scmp.lt.s32.totalorder %s2269_s15, 2  ;;  %p2442_p11 = por %p93_p7, %p63_p0 }
  0x11   : > { %p2446_p12 = por %p99_p8, %p69_p3  ;;  %s152_s25 = sand.u32 1, %s2265_s14  }
  0x12   : > { %s3535_s23 = scalar_select %p2442_p11, 1, 0 }
  0x13   : > { %s3536_s24 = scalar_select %p2446_p12, 1, 0 }
  0x14   : > { %s1797_s26 = sshll.u32 %s2269_s15, 7  ;;  %s1804_s27 = smul.u32 24, %s152_s25 }
  0x15   : > { %s2455_s30 = scalar_lea.hbm %s3491_s1, %s1797_s26  ;;  %p2457_p13 = pnand %p1824_p10, %p65_p5 }
  0x16   : > { %s156_s5 = scalar_lea.vmem [#allocation3], %s1804_s27  ;;  %s2464_s7 = scalar_lea.sflag [#allocation4], %s152_s25 }
  0x17   : > { %s162_s6 = sshll.u32 %s156_s5, 4  ;;  %s2055_s8 = scalar_lea.hbm %s2455_s30, 384  ;;  %s2461_s6 = int_to_ptr.vmem [resolvable:$true] %s162_s6 }
  0x18   : > { %p2056_p1 = scmp.ne.s32.totalorder %s2455_s30, %s2055_s8  ;;  %p2057_p2 = pneg %p2457_p13 }
  0x19   : > { %s2060_s11 = scalar_lea.hbm %s3491_s1, 768  ;;  %p2061_p5 = scmp.lt.s32.totalorder %s2455_s30, %s3491_s1 }
  0x1a   : > { %p2058_p3 = pnand %p2057_p2, %p2056_p1  ;;  %p2062_p7 = scmp.lt.s32.totalorder %s2060_s11, %s2055_s8 }
  0x1c   : > { %p2059_p4 = pneg %p2058_p3  ;;  %p2063_p8 = por %p2062_p7, %p2061_p5 }
  0x1e   : > { %p2064_p10 = pnand %p2063_p8, %p2059_p4 }
  0x20   : > { %2067 = shalt.err (!%p2064_p10)
}
  0x21   : > { %s2068_s20 = scalar_lea.vmem %s2461_s6, 384  ;;  %s2363_s25 = smov [#allocation3]  }
  0x22   : > { %p2069_p9 = scmp.ne.s32.totalorder %s2461_s6, %s2068_s20  ;;  %s2073_s26 = sshll.u32 %s2363_s25, 4  ;;  %s2074_s26 = int_to_ptr.vmem [resolvable:$false] %s2073_s26 }
  0x23   : > { %s2075_s27 = scalar_lea.vmem %s2074_s26, 768  ;;  %p2076_p3 = scmp.lt.s32.totalorder %s2461_s6, %s2074_s26 }
  0x24   : > { %p2071_p0 = pnand %p2069_p9, %p2057_p2  ;;  %p2077_p12 = scmp.lt.s32.totalorder %s2075_s27, %s2068_s20 }
  0x26   : > { %p2072_p1 = pneg %p2071_p0  ;;  %p2078_p11 = por %p2077_p12, %p2076_p3 }
  0x28   : > { %p2079_p6 = pnand %p2078_p11, %p2072_p1 }
  0x2a   : > { %2082 = shalt.err (!%p2079_p6)
}
  0x2b   : > { %s2364_s28 = smov 256   ;;  %s2365_s29 = smov 128  }
  0x2c   : > { %s2366_s5 = smov 8   ;;  %p170_p9 = scmp.lt.s32.totalorder %s2269_s15, 3 }
  0x2d   : > { %1816 = dma.hbm_to_vmem [thread:$0]  (!%p2457_p13), %s2455_s30, 384, %s2461_s6, %s2464_s7, %s2364_s28, %s2365_s29, %s2366_s5  }
  0x2e   : > { %p3538_p0 = scmp.ge.s32.totalorder %s2269_s15, 1 }
  0x30   : > { %p171_p2 = pnand %p3538_p0, %p170_p9 }
  0x32   : > { %174 = sbr.rel (%p171_p2) target bundleno = 1724 (0x6bc), region = 28 }
  0x37   : > { %s2489_s8 = sand.u32 1, %s2261_s13   ;;  %p3539_p6 = scmp.ne.s32.totalorder %s3534_s22, 0 }
  0x38   : > { %s1805_s9 = smul.u32 24, %s2489_s8  ;;  %s177_s10 = scalar_lea.sflag [#allocation4], %s2489_s8 }
  0x3a   : > { %s180_s11 = scalar_lea.vmem [#allocation3], %s1805_s9 }
  0x3b   : > { %2244 = dma.done.wait (%p3539_p6), %s177_s10, 384  }
  0x3c   : > { %2246 = vsyncadd (%p3539_p6), %s177_s10, 4294966912  ;;  %p212_p11 = scmp.lt.s32.totalorder %s2417_s16, 1  ;;  %v219_v0 = vlaneseq  ;;  %s1806_s30 = smul.u32 192, %s2489_s8  ;;  %v2506_v2 = vld [vmem:[%s180_s11] sm:$0xff]  ;;  %v2508_v3 = vld [vmem:[%s180_s11 + $0x8] sm:$0xff]  ;;  %v2516_v6 = vmov 0.0  }
  0x3d   : > { %v2510_v4 = vld [vmem:[%s180_s11 + $0x10] sm:$0xff]  ;;  %s2512_s22 = scalar_lea.vmem [#allocation6], %s1805_s9  ;;  %v2518_v7 = vmov 0.0   ;;  %v2520_v8 = vmov 0.0   ;;  %v2522_v9 = vmov inf   ;;  %s2526_s25 = smov 0  }
  0x3e   : > { %s213_s4 = scalar_select %p212_p11, %s2417_s16, 1  ;;  %v2501_v1 = vand.u32 127, %v219_v0 }
  0x3f   : > { %s2514_s20 = scalar_lea.vmem [#allocation7], %s1806_s30 }
  0x40   : > { %s1799_s6 = sshll.u32 %s213_s4, 3 }
  0x41   : > { %s215_s19 = scalar_lea.vmem %s3490_s0, %s1799_s6 }
  0x42   : > { %v221_v5 = vld [vmem:[%s215_s19] sm:$0xff]  }
  0x43 LB: >> { %v2367_v10 = vmov 0   ;;  %v248_v15 = vstv %s2293_s25  ;;  %s227_s25 = sadd.s32 1, %s2293_s25   ;;  %s2293_s25 = sphi %s2526_s25, %s227_s25   ;;  %v2289_v5 = vphi %v221_v5, %v281_v5   ;;  %v2285_v9 = vphi %v2522_v9, %v263_v9   ;;  %v2281_v8 = vphi %v2520_v8, %v3545_v8   ;;  %v2277_v7 = vphi %v2518_v7, %v3544_v7   ;;  %v2273_v6 = vphi %v2516_v6, %v3543_v6  }
  0x44   : >> { %2052 = vset.pattern.permute.xlu0 %v2367_v10  ;;  %vm249_vm1 = vcmp.eq.s32.totalorder %v2501_v1, %v248_v15  ;;  %p224_p12 = scmp.ge.s32.totalorder %s227_s25, 8  }
  0x45   : >> { %234 = vperm.xlu0 %2052, %v2289_v5   ;;  %v2569_v42 = vshrl.u32 (%p224_p12), %v219_v0, 7  ;;  %v2368_v43 = vmov (%p224_p12), 1966171168   ;;  %v286_v58 = vcombine.high (%p224_p12), %v2506_v2, %v2506_v2  ;;  %v336_v10 = vcombine.high (%p224_p12), %v2508_v3, %v2508_v3  ;;  %s2903_s26 = smov (%p224_p12), 0  }
  0x46   : > { %v288_v44 = vunpack.c.l.s4 (%p224_p12), %v2368_v43 }
  0x47   : > { %3546 = vst [vmem:[#allocation12_spill] sm:$0xff] (%p224_p12), %v2569_v42  ;;  %v2578_v45 = vsub.s32 (%p224_p12), 2, %v2569_v42  ;;  %v2581_v46 = vsub.s32 (%p224_p12), 0, %v2569_v42  ;;  %v2584_v47 = vsub.s32 (%p224_p12), 3, %v2569_v42  ;;  %v2587_v48 = vsub.s32 (%p224_p12), 1, %v2569_v42 }
  0x48   : > { %v289_v49 = vunpack.c.0.s8 (%p224_p12), %v288_v44  ;;  %v2598_v52 = vsub.s32 (%p224_p12), 5, %v2569_v42  ;;  %v2601_v53 = vsub.s32 (%p224_p12), 4, %v2569_v42  ;;  %v2617_v57 = vsub.s32 (%p224_p12), 7, %v2569_v42 }
  0x49   : > { %v2622_v59 = vsub.s32 (%p224_p12), 6, %v2569_v42 }
  0x4a   : > { %v2605_v54 = vsub.s32 (%p224_p12), %v289_v49, %v2569_v42 }
  0x4c   : > { %v293_v63 = vrot.slane (%p224_p12), %v2506_v2, %v2605_v54 }
  0xc0   : >> { %v235_v11 = vpop.permute.xlu0 %234 }
  0xc1   : >> { %vm236_vm0 = vcmp.eq.s32.totalorder %v2501_v1, %v235_v11 }
  0xc2   : >> { %v240_v12 = vsel %vm236_vm0, %v2508_v3, 0.0  ;;  %v239_v13 = vsel %vm236_vm0, %v2506_v2, 0.0  ;;  %v241_v14 = vsel %vm236_vm0, %v2510_v4, 0.0 }
  0xc3   : >> { %244 = vadd.xlane.f32.xlu1 %v240_v12  ;;  %242 = vadd.xlane.f32.xlu0 %v239_v13 }
  0xc7   : >> { %246 = vadd.xlane.f32.xlu1 %v241_v14 }
 0x14c   : >> { %v245_v16 = vpop.xlane.xlu1 %244  ;;  %v243_v17 = vpop.xlane.xlu0 %242 }
 0x14d   : >> { %v2542_v7 = vsel %vm249_vm1, %v245_v16, %v2277_v7   ;;  %v256_v19 = vsub.f32 %v2508_v3, %v245_v16  ;;  %v2545_v8 = vsel %vm249_vm1, %v243_v17, %v2281_v8   ;;  %v255_v21 = vsub.f32 %v2506_v2, %v243_v17 }
 0x14e   : >> { %v3540_v18 = vmov %v2542_v7  ;;  %v3541_v20 = vmov %v2545_v8  ;;  %v301_v2 = vcombine.high (%p224_p12), %v293_v63, %v293_v63 }
 0x14f   : >> { %v259_v22 = vmul.f32 %v256_v19, %v256_v19  ;;  %v258_v23 = vmul.f32 %v255_v21, %v255_v21  ;;  %v3544_v7 = vmov %v3540_v18  ;;  %v3545_v8 = vmov %v3541_v20  ;;  %282 = vst [vmem:[%s2512_s22] sm:$0xff] (%p224_p12), %v3541_v20  ;;  %283 = vst [vmem:[%s2512_s22 + $0x8] sm:$0xff] (%p224_p12), %v3540_v18 }
 0x150   : >> { %v247_v24 = vpop.xlane.xlu1 %246  ;;  %v2591_v50 = vrot.slane (%p224_p12), %v3541_v20, %v2578_v45  ;;  %v2595_v51 = vrot.slane (%p224_p12), %v3541_v20, %v2581_v46  ;;  %v2610_v55 = vrot.slane (%p224_p12), %v3541_v20, %v2584_v47  ;;  %v2614_v56 = vrot.slane (%p224_p12), %v3541_v20, %v2587_v48 }
 0x151   : >> { %v2548_v6 = vsel %vm249_vm1, %v247_v24, %v2273_v6   ;;  %v257_v26 = vsub.f32 %v2510_v4, %v247_v24  ;;  %v261_v27 = vadd.f32 %v259_v22, %v258_v23  ;;  %v2626_v60 = vrot.slane (%p224_p12), %v3541_v20, %v2598_v52 }
 0x152   : >> { %v3542_v25 = vmov %v2548_v6  ;;  %3547 = vst [vmem:[#allocation13_spill] sm:$0xff] (%p224_p12), %v2591_v50  ;;  %3548 = vst [vmem:[#allocation14_spill] sm:$0xff] (%p224_p12), %v2595_v51  ;;  %440 = vbcast.lane.b32.xlu0 (%p224_p12), %v2595_v51, 256  ;;  %v2632_v61 = vrot.slane (%p224_p12), %v3541_v20, %v2601_v53  ;;  %v2636_v62 = vrot.slane (%p224_p12), %v3541_v20, %v2617_v57 }
 0x153   : >> { %v260_v28 = vmul.f32 %v257_v26, %v257_v26  ;;  %v3543_v6 = vmov %v3542_v25  ;;  %284 = vst [vmem:[%s2512_s22 + $0x10] sm:$0xff] (%p224_p12), %v3542_v25  ;;  %3549 = vst [vmem:[#allocation15_spill] sm:$0xff] (%p224_p12), %v2610_v55  ;;  %v2642_v0 = vrot.slane (%p224_p12), %v3540_v18, %v2587_v48  ;;  %v343_v7 = vrot.slane (%p224_p12), %v2508_v3, %v2605_v54 }
 0x154   : > { %3550 = vst [vmem:[#allocation16_spill] sm:$0xff] (%p224_p12), %v2614_v56  ;;  %3551 = vst [vmem:[#allocation17_spill] sm:$0xff] (%p224_p12), %v2626_v60  ;;  %v300_v6 = vrot.slane (%p224_p12), %v286_v58, %v2605_v54  ;;  %v2653_v8 = vrot.slane (%p224_p12), %v3541_v20, %v2622_v59  ;;  %v323_v17 = vrot.slane (%p224_p12), %v301_v2, %v2605_v54 }
 0x155   : >> { %v262_v29 = vadd.f32 %v261_v27, %v260_v28  ;;  %3552 = vst [vmem:[#allocation18_spill] sm:$0xff] (%p224_p12), %v2632_v61  ;;  %3553 = vst [vmem:[#allocation19_spill] sm:$0xff] (%p224_p12), %v2636_v62  ;;  %v351_v13 = vcombine.high (%p224_p12), %v343_v7, %v343_v7  ;;  %v359_v14 = vrot.slane (%p224_p12), %v343_v7, %v2605_v54 }
 0x156   : > { %447 = vbcast.lane.b32.xlu0 (%p224_p12), %v2614_v56, 256  ;;  %3554 = vst [vmem:[#allocation20_spill] sm:$0xff] (%p224_p12), %v2642_v0  ;;  %3556 = vst [vmem:[#allocation22_spill] sm:$0xff] (%p224_p12), %v2653_v8  ;;  %v302_v11 = vcombine.high (%p224_p12), %v300_v6, %v300_v6  ;;  %v316_v12 = vrot.slane (%p224_p12), %v300_v6, %v2605_v54  ;;  %v333_v23 = vcombine.high (%p224_p12), %v323_v17, %v323_v17 }
 0x157   : >> { %v263_v9 = vmin.f32 %v2285_v9, %v262_v29   ;;  %v373_v21 = vrot.slane (%p224_p12), %v351_v13, %v2605_v54  ;;  %v2675_v24 = vrot.slane (%p224_p12), %v323_v17, %v2581_v46  ;;  %v2678_v26 = vrot.slane (%p224_p12), %v359_v14, %v2581_v46 }
 0x158   : > { %v330_v19 = vrot.slane (%p224_p12), %v302_v11, %v2605_v54  ;;  %v2668_v3 = vrot.slane (%p224_p12), %v316_v12, %v2581_v46  ;;  %v332_v20 = vcombine.high (%p224_p12), %v316_v12, %v316_v12  ;;  %v2712_v44 = vrot.slane (%p224_p12), %v3540_v18, %v2584_v47 }
 0x159   : >> { %264 = vmax.xlane.f32.xlu1 %v263_v9  ;;  %3557 = vst [vmem:[#allocation23_spill] sm:$0xff] (%p224_p12), %v2675_v24  ;;  %3558 = vst [vmem:[#allocation24_spill] sm:$0xff] (%p224_p12), %v2678_v26  ;;  %v2716_v49 = vrot.slane (%p224_p12), %v3540_v18, %v2578_v45  ;;  %v2729_v2 = vrot.slane (%p224_p12), %v3540_v18, %v2601_v53  ;;  %v386_v11 = vcombine.high (%p224_p12), %v2510_v4, %v2510_v4 }
 0x15a   : > { %468 = vbcast.lane.b32.xlu0 (%p224_p12), %v2632_v61, 256  ;;  %v2681_v27 = vrot.slane (%p224_p12), %v330_v19, %v2581_v46  ;;  %v334_v28 = vcombine.high (%p224_p12), %v330_v19, %v330_v19  ;;  %v2684_v29 = vrot.slane (%p224_p12), %v332_v20, %v2581_v46  ;;  %3561 = vst [vmem:[#allocation27_spill] sm:$0xff] (%p224_p12), %v2712_v44 }
 0x15b   : > { %3562 = vst [vmem:[#allocation28_spill] sm:$0xff] (%p224_p12), %v2716_v49  ;;  %3564 = vst [vmem:[#allocation30_spill] sm:$0xff] (%p224_p12), %v2729_v2  ;;  %v400_v20 = vrot.slane (%p224_p12), %v386_v11, %v2605_v54  ;;  %v2369_v11 = vmov (%p224_p12), 0.0  }
 0x15c   : > { %795 = vst [vmem:[%s2514_s20] sm:$0xff] (%p224_p12), %v2369_v11  ;;  %796 = vst [vmem:[%s2514_s20 + $0x8] sm:$0xff] (%p224_p12), %v2369_v11 }
 0x15d   : > { %797 = vst [vmem:[%s2514_s20 + $0x10] sm:$0xff] (%p224_p12), %v2369_v11  ;;  %798 = vst [vmem:[%s2514_s20 + $0x18] sm:$0xff] (%p224_p12), %v2369_v11 }
 0x15e   : > { %482 = vbcast.lane.b32.xlu0 (%p224_p12), %v2653_v8, 256  ;;  %799 = vst [vmem:[%s2514_s20 + $0x20] sm:$0xff] (%p224_p12), %v2369_v11  ;;  %800 = vst [vmem:[%s2514_s20 + $0x28] sm:$0xff] (%p224_p12), %v2369_v11 }
 0x15f   : > { %801 = vst [vmem:[%s2514_s20 + $0x30] sm:$0xff] (%p224_p12), %v2369_v11  ;;  %802 = vst [vmem:[%s2514_s20 + $0x38] sm:$0xff] (%p224_p12), %v2369_v11 }
 0x160   : > { %803 = vst [vmem:[%s2514_s20 + $0x40] sm:$0xff] (%p224_p12), %v2369_v11  ;;  %804 = vst [vmem:[%s2514_s20 + $0x48] sm:$0xff] (%p224_p12), %v2369_v11 }
 0x161   : > { %805 = vst [vmem:[%s2514_s20 + $0x50] sm:$0xff] (%p224_p12), %v2369_v11  ;;  %806 = vst [vmem:[%s2514_s20 + $0x58] sm:$0xff] (%p224_p12), %v2369_v11 }
 0x162   : > { %807 = vst [vmem:[%s2514_s20 + $0x60] sm:$0xff] (%p224_p12), %v2369_v11  ;;  %808 = vst [vmem:[%s2514_s20 + $0x68] sm:$0xff] (%p224_p12), %v2369_v11 }
 0x163   : > { %809 = vst [vmem:[%s2514_s20 + $0x70] sm:$0xff] (%p224_p12), %v2369_v11  ;;  %810 = vst [vmem:[%s2514_s20 + $0x78] sm:$0xff] (%p224_p12), %v2369_v11 }
 0x164   : > { %811 = vst [vmem:[%s2514_s20 + $0x80] sm:$0xff] (%p224_p12), %v2369_v11  ;;  %812 = vst [vmem:[%s2514_s20 + $0x88] sm:$0xff] (%p224_p12), %v2369_v11 }
 0x165   : > { %813 = vst [vmem:[%s2514_s20 + $0x90] sm:$0xff] (%p224_p12), %v2369_v11  ;;  %814 = vst [vmem:[%s2514_s20 + $0x98] sm:$0xff] (%p224_p12), %v2369_v11 }
 0x166   : > { %815 = vst [vmem:[%s2514_s20 + $0xa0] sm:$0xff] (%p224_p12), %v2369_v11  ;;  %816 = vst [vmem:[%s2514_s20 + $0xa8] sm:$0xff] (%p224_p12), %v2369_v11 }
 0x167   : > { %817 = vst [vmem:[%s2514_s20 + $0xb0] sm:$0xff] (%p224_p12), %v2369_v11  ;;  %818 = vst [vmem:[%s2514_s20 + $0xb8] sm:$0xff] (%p224_p12), %v2369_v11 }
 0x1e2   : >> { %v265_v30 = vpop.xlane.xlu1 %264 }
 0x1e3   : >> { %vm266_vm2 = vcmp.eq.f32.partialorder %v263_v9, %v265_v30  ;;  %v309_v9 = vrot.slane (%p224_p12), %v293_v63, %v2605_v54  ;;  %v2687_v30 = vrot.slane (%p224_p12), %v373_v21, %v2581_v46 }
 0x1e4   : >> { %v267_v31 = vsel %vm266_vm2, %v2501_v1, 128 }
 0x1e5   : >> { %v269_v32 = vshra.s32 %v267_v31, 16  ;;  %v268_v34 = vand.u32 65535, %v267_v31  ;;  %v331_v15 = vcombine.high (%p224_p12), %v309_v9, %v309_v9  ;;  %v2663_v16 = vrot.slane (%p224_p12), %v309_v9, %v2581_v46  ;;  %3559 = vst [vmem:[#allocation25_spill] sm:$0xff] (%p224_p12), %v2687_v30 }
 0x1e6   : > { %v2692_v31 = vrot.slane (%p224_p12), %v333_v23, %v2581_v46  ;;  %v2725_v9 = vrot.slane (%p224_p12), %v3540_v18, %v2598_v52 }
 0x1e7   : >> { %v271_v33 = vcvt.s32.f32 %v269_v32  ;;  %v270_v35 = vcvt.s32.f32 %v268_v34  ;;  %v2672_v22 = vrot.slane (%p224_p12), %v331_v15, %v2581_v46  ;;  %v383_v32 = vcombine.high (%p224_p12), %v373_v21, %v373_v21 }
 0x1e8   : > { %3560 = vst [vmem:[#allocation26_spill] sm:$0xff] (%p224_p12), %v2692_v31  ;;  %v2695_v34 = vrot.slane (%p224_p12), %v334_v28, %v2581_v46  ;;  %3563 = vst [vmem:[#allocation29_spill] sm:$0xff] (%p224_p12), %v2725_v9  ;;  %v402_v28 = vcombine.high (%p224_p12), %v400_v20, %v400_v20 }
 0x1e9   : >> { %272 = vmin.xlane.f32.xlu1 %v271_v33 }
 0x272   : >> { %v273_v36 = vpop.xlane.xlu1 %272 }
 0x273   : >> { %vm274_vm3 = vcmp.eq.f32.partialorder %v271_v33, %v273_v36  ;;  %v279_v38 = vcvt.f32.s32 %v273_v36  ;;  %v381_v33 = vcombine.high (%p224_p12), %v359_v14, %v359_v14  ;;  %v393_v36 = vrot.slane (%p224_p12), %v2510_v4, %v2605_v54 }
 0x274   : >> { %v275_v37 = vsel %vm274_vm3, %v270_v35, inf  ;;  %v350_v35 = vrot.slane (%p224_p12), %v336_v10, %v2605_v54 }
 0x275   : >> { %276 = vmin.xlane.f32.xlu1 %v275_v37  ;;  %v280_v40 = vshll.u32 %v279_v38, 16  ;;  %v2701_v37 = vrot.slane (%p224_p12), %v383_v32, %v2581_v46  ;;  %v2704_v38 = vrot.slane (%p224_p12), %v381_v33, %v2581_v46  ;;  %v409_v43 = vrot.slane (%p224_p12), %v393_v36, %v2605_v54 }
 0x276   : > { %v416_v32 = vrot.slane (%p224_p12), %v400_v20, %v2605_v54  ;;  %v2762_v33 = vrot.slane (%p224_p12), %v3540_v18, %v2617_v57 }
 0x277   : > { %v2732_v10 = vrot.slane (%p224_p12), %v409_v43, %v2581_v46  ;;  %v431_v19 = vcombine.high (%p224_p12), %v409_v43, %v409_v43 }
 0x278   : > { %3566 = vst [vmem:[#allocation32_spill] sm:$0xff] (%p224_p12), %v2762_v33  ;;  %v432_v43 = vcombine.high (%p224_p12), %v416_v32, %v416_v32 }
 0x279   : > { %v2755_v23 = vrot.slane (%p224_p12), %v431_v19, %v2581_v46 }
 0x286   : > { %454 = vbcast.lane.b32.xlu1 (%p224_p12), %v2591_v50, 256 }
 0x28a   : > { %461 = vbcast.lane.b32.xlu1 (%p224_p12), %v2610_v55, 256 }
 0x28e   : > { %475 = vbcast.lane.b32.xlu1 (%p224_p12), %v2626_v60, 256 }
 0x292   : > { %489 = vbcast.lane.b32.xlu1 (%p224_p12), %v2636_v62, 256 }
 0x296   : > { %559 = vbcast.lane.b32.xlu1 (%p224_p12), %v2642_v0, 256 }
 0x29a   : > { %573 = vbcast.lane.b32.xlu1 (%p224_p12), %v2712_v44, 256 }
 0x29e   : > { %587 = vbcast.lane.b32.xlu1 (%p224_p12), %v2725_v9, 256 }
 0x2a2   : > { %601 = vbcast.lane.b32.xlu1 (%p224_p12), %v2762_v33, 256 }
 0x2fd   : > { %226 = sbr.rel (!%p224_p12) target bundleno = 67 (0x43), region = 108 }
 0x2fe   : >> { %v277_v39 = vpop.xlane.xlu1 %276 }
 0x2ff   : >> { %v278_v41 = vcvt.f32.s32 %v277_v39  ;;  %v352_v39 = vcombine.high (%p224_p12), %v350_v35, %v350_v35 }
 0x301   : >> { %v281_v5 = vadd.s32 %v280_v40, %v278_v41   ;;  %v366_v40 = vrot.slane (%p224_p12), %v350_v35, %v2605_v54  ;;  %v401_v41 = vcombine.high (%p224_p12), %v393_v36, %v393_v36  ;;  %v380_v58 = vrot.slane (%p224_p12), %v352_v39, %v2605_v54 }
 0x302   : > { %v2646_v5 = vrot.slane %v3540_v18, %v2581_v46  ;;  %v2766_v35 = vrot.slane %v3540_v18, %v2622_v59  ;;  %v430_v36 = vrot.slane %v402_v28, %v2605_v54  ;;  %v2770_v39 = vrot.slane %v416_v32, %v2581_v46 }
 0x303   : > { %v2720_v63 = vrot.slane %v366_v40, %v2581_v46  ;;  %v382_v6 = vcombine.high %v366_v40, %v366_v40  ;;  %v423_v7 = vrot.slane %v401_v41, %v2605_v54  ;;  %v2737_v12 = vrot.slane %v380_v58, %v2581_v46 }
 0x304   : > { %3555 = vst [vmem:[#allocation21_spill] sm:$0xff] %v2646_v5  ;;  %552 = vbcast.lane.b32.xlu0 %v2646_v5, 256  ;;  %v384_v13 = vcombine.high %v380_v58, %v380_v58  ;;  %3567 = vst [vmem:[#allocation33_spill] sm:$0xff] %v2766_v35  ;;  %v2773_v40 = vrot.slane %v430_v36, %v2581_v46  ;;  %v434_v41 = vcombine.high %v430_v36, %v430_v36 }
 0x305   : > { %3565 = vst [vmem:[#allocation31_spill] sm:$0xff] %v2737_v12  ;;  %v2740_v14 = vrot.slane %v382_v6, %v2581_v46  ;;  %v2743_v15 = vrot.slane %v423_v7, %v2581_v46  ;;  %v433_v17 = vcombine.high %v423_v7, %v423_v7  ;;  %v2779_v18 = vrot.slane %v3542_v25, %v2587_v48 }
 0x306   : > { %v2749_v4 = vrot.slane %v384_v13, %v2581_v46  ;;  %v2783_v54 = vrot.slane %v3542_v25, %v2581_v46  ;;  %v2786_v58 = vrot.slane %v434_v41, %v2581_v46  ;;  %v2789_v6 = vrot.slane %v432_v43, %v2581_v46  ;;  %v441_v13 = vpop.permute.xlu0 %440 }
 0x307   : > { %v2752_v21 = vrot.slane %v433_v17, %v2581_v46  ;;  %3568 = vst [vmem:[#allocation34_spill] sm:$0xff] %v2779_v18  ;;  %679 = vbcast.lane.b32.xlu1 %v2779_v18, 256  ;;  %v2795_v48 = vrot.slane %v3542_v25, %v2584_v47  ;;  %v2799_v7 = vrot.slane %v3542_v25, %v2578_v45 }
 0x308   : > { %566 = vbcast.lane.b32.xlu0 %v2716_v49, 256  ;;  %3569 = vst [vmem:[#allocation35_spill] sm:$0xff] %v2783_v54  ;;  %v2805_v46 = vrot.slane %v3542_v25, %v2598_v52  ;;  %v2809_v47 = vrot.slane %v3542_v25, %v2601_v53  ;;  %v2839_v45 = vrot.slane %v3542_v25, %v2617_v57  ;;  %v455_v53 = vpop.permute.xlu1 %454 }
 0x309   : > { %3570 = vst [vmem:[#allocation36_spill] sm:$0xff] %v2795_v48  ;;  %3571 = vst [vmem:[#allocation37_spill] sm:$0xff] %v2799_v7  ;;  %v2843_v52 = vrot.slane %v3542_v25, %v2622_v59  ;;  %v531_v41 = vsub.f32 %v441_v13, %v2663_v16  ;;  %v533_v42 = vsub.f32 %v455_v53, %v2672_v22 }
 0x30a   : > { %3572 = vst [vmem:[#allocation38_spill] sm:$0xff] %v2805_v46  ;;  %3573 = vst [vmem:[#allocation39_spill] sm:$0xff] %v2809_v47  ;;  %v448_v19 = vpop.permute.xlu0 %447 }
 0x30b   : > { %693 = vbcast.lane.b32.xlu1 %v2795_v48, 256  ;;  %3574 = vst [vmem:[#allocation40_spill] sm:$0xff] %v2839_v45  ;;  %3575 = vst [vmem:[#allocation41_spill] sm:$0xff] %v2843_v52  ;;  %v532_v57 = vsub.f32 %v448_v19, %v2675_v24  ;;  %v539_v33 = vmul.f32 %v531_v41, %v531_v41 }
 0x30c   : > { %580 = vbcast.lane.b32.xlu0 %v2729_v2, 256  ;;  %v462_v17 = vpop.permute.xlu1 %461 }
 0x30e   : > { %v469_v28 = vpop.permute.xlu0 %468 }
 0x30f   : > { %707 = vbcast.lane.b32.xlu1 %v2805_v46, 256 }
 0x310   : > { %594 = vbcast.lane.b32.xlu0 %v2766_v35, 256  ;;  %v476_v20 = vpop.permute.xlu1 %475 }
 0x312   : > { %v483_v36 = vpop.permute.xlu0 %482 }
 0x313   : > { %721 = vbcast.lane.b32.xlu1 %v2839_v45, 256  ;;  %v534_v45 = vsub.f32 %v462_v17, %v2692_v31 }
 0x314   : > { %672 = vbcast.lane.b32.xlu0 %v2783_v54, 256  ;;  %v490_v32 = vpop.permute.xlu1 %489 }
 0x315   : > { %v542_v53 = vmul.f32 %v534_v45, %v534_v45 }
 0x318   : > { %686 = vbcast.lane.b32.xlu0 %v2799_v7, 256  ;;  %v560_v43 = vpop.permute.xlu1 %559 }
 0x319   : > { %v644_v25 = vsub.f32 %v560_v43, %v2687_v30  ;;  %v536_v43 = vsub.f32 %v476_v20, %v2681_v27  ;;  %v541_v30 = vmul.f32 %v533_v42, %v533_v42 }
 0x31b   : > { %v652_v62 = vmul.f32 %v644_v25, %v644_v25 }
 0x31c   : > { %700 = vbcast.lane.b32.xlu0 %v2809_v47, 256  ;;  %v574_v46 = vpop.permute.xlu1 %573 }
 0x31d   : > { %v646_v19 = vsub.f32 %v574_v46, %v2701_v37  ;;  %v537_v46 = vsub.f32 %v483_v36, %v2684_v29 }
 0x31f   : > { %v654_v41 = vmul.f32 %v646_v19, %v646_v19 }
 0x320   : > { %714 = vbcast.lane.b32.xlu0 %v2843_v52, 256  ;;  %v540_v52 = vmul.f32 %v532_v57, %v532_v57  ;;  %v588_v17 = vpop.permute.xlu1 %587 }
 0x321   : > { %v662_v25 = vadd.f32 %v654_v41, %v542_v53  ;;  %v648_v31 = vsub.f32 %v588_v17, %v2737_v12  ;;  %v545_v53 = vmul.f32 %v537_v46, %v537_v46 }
 0x322   : > { %v660_v47 = vadd.f32 %v652_v62, %v540_v52 }
 0x323   : > { %v656_v52 = vmul.f32 %v648_v31, %v648_v31 }
 0x324   : > { %v602_v42 = vpop.permute.xlu1 %601 }
 0x325   : > { %v650_v19 = vsub.f32 %v602_v42, %v2749_v4 }
 0x327   : > { %v658_v41 = vmul.f32 %v650_v19, %v650_v19 }
 0x376   : > { %v553_v11 = vpop.permute.xlu0 %552 }
 0x377   : > { %v643_v59 = vsub.f32 %v553_v11, %v2678_v26  ;;  %v535_v11 = vsub.f32 %v469_v28, %v2668_v3 }
 0x379   : > { %v651_v35 = vmul.f32 %v643_v59, %v643_v59 }
 0x37a   : > { %v567_v8 = vpop.permute.xlu0 %566 }
 0x37b   : > { %v659_v13 = vadd.f32 %v651_v35, %v539_v33  ;;  %v645_v24 = vsub.f32 %v567_v8, %v2704_v38  ;;  %v544_v33 = vmul.f32 %v536_v43, %v536_v43  ;;  %v543_v35 = vmul.f32 %v535_v11, %v535_v11  ;;  %v680_v43 = vpop.permute.xlu1 %679 }
 0x37c   : > { %v538_v8 = vsub.f32 %v490_v32, %v2695_v34  ;;  %v764_v36 = vsub.f32 %v680_v43, %v2743_v15 }
 0x37d   : > { %v653_v26 = vmul.f32 %v645_v24, %v645_v24  ;;  %v664_v28 = vadd.f32 %v656_v52, %v544_v33 }
 0x37e   : > { %v581_v57 = vpop.permute.xlu0 %580 }
 0x37f   : > { %v661_v59 = vadd.f32 %v653_v26, %v541_v30  ;;  %v647_v62 = vsub.f32 %v581_v57, %v2720_v63  ;;  %v546_v30 = vmul.f32 %v538_v8, %v538_v8  ;;  %v694_v33 = vpop.permute.xlu1 %693 }
 0x380   : > { %v766_v42 = vsub.f32 %v694_v33, %v2752_v21 }
 0x381   : > { %v655_v20 = vmul.f32 %v647_v62, %v647_v62  ;;  %v666_v57 = vadd.f32 %v658_v41, %v546_v30  ;;  %v772_v62 = vmul.f32 %v764_v36, %v764_v36 }
 0x382   : > { %v595_v45 = vpop.permute.xlu0 %594  ;;  %v774_v46 = vmul.f32 %v766_v42, %v766_v42  ;;  %v2875_v42 = vmov 4294967295  }
 0x383   : > { %v663_v24 = vadd.f32 %v655_v20, %v543_v35  ;;  %v649_v26 = vsub.f32 %v595_v45, %v2740_v14  ;;  %v780_v52 = vadd.f32 %v772_v62, %v660_v47  ;;  %v708_v19 = vpop.permute.xlu1 %707 }
 0x384   : > { %v782_v30 = vadd.f32 %v774_v46, %v662_v25  ;;  %v768_v41 = vsub.f32 %v708_v19, %v2773_v40  ;;  %v2883_v46 = vmov 4294967295   ;;  %v2891_v19 = vmov -inf  }
 0x385   : > { %v657_v17 = vmul.f32 %v649_v26, %v649_v26  ;;  %788 = vst [vmem:[#allocation2] sm:$0xff] %v780_v52  ;;  %v2871_v52 = vmov 4294967295  }
 0x386   : > { %v673_v11 = vpop.permute.xlu0 %672  ;;  %790 = vst [vmem:[#allocation2 + $0x10] sm:$0xff] %v782_v30  ;;  %v776_v47 = vmul.f32 %v768_v41, %v768_v41  ;;  %v2895_v30 = vmov -inf   ;;  %v2899_v41 = vmov -inf  }
 0x387   : > { %v665_v32 = vadd.f32 %v657_v17, %v545_v53  ;;  %v763_v31 = vsub.f32 %v673_v11, %v2732_v10 }
 0x388   : > { %v784_v11 = vadd.f32 %v776_v47, %v664_v28  ;;  %v2877_v28 = vmov 4294967295  }
 0x389   : > { %v771_v12 = vmul.f32 %v763_v31, %v763_v31 }
 0x38a   : > { %v687_v35 = vpop.permute.xlu0 %686  ;;  %792 = vst [vmem:[#allocation2 + $0x20] sm:$0xff] %v784_v11 }
 0x38b   : > { %v779_v20 = vadd.f32 %v771_v12, %v659_v13  ;;  %v765_v8 = vsub.f32 %v687_v35, %v2755_v23  ;;  %v722_v13 = vpop.permute.xlu1 %721 }
 0x38c   : > { %v770_v31 = vsub.f32 %v722_v13, %v2786_v58 }
 0x38d   : > { %787 = vst [vmem:[#allocation2 + $0x30] sm:$0xff] %v779_v20  ;;  %v773_v45 = vmul.f32 %v765_v8, %v765_v8  ;;  %v2873_v20 = vmov 4294967295   ;;  %v2881_v8 = vmov 4294967295  }
 0x38e   : > { %v701_v26 = vpop.permute.xlu0 %700  ;;  %v778_v25 = vmul.f32 %v770_v31, %v770_v31 }
 0x38f   : > { %v781_v53 = vadd.f32 %v773_v45, %v661_v59  ;;  %v767_v17 = vsub.f32 %v701_v26, %v2770_v39  ;;  %v2885_v45 = vmov 4294967295   ;;  %v2893_v26 = vmov -inf  }
 0x390   : > { %v786_v33 = vadd.f32 %v778_v25, %v666_v57  ;;  %v2887_v57 = vmov -inf  }
 0x391   : > { %789 = vst [vmem:[#allocation2 + $0x18] sm:$0xff] %v781_v53  ;;  %v775_v12 = vmul.f32 %v767_v17, %v767_v17  ;;  %v2897_v53 = vmov -inf   ;;  %v2901_v17 = vmov -inf  }
 0x392   : > { %v715_v43 = vpop.permute.xlu0 %714  ;;  %794 = vst [vmem:[#allocation2 + $0x38] sm:$0xff] %v786_v33 }
 0x393   : > { %v783_v36 = vadd.f32 %v775_v12, %v663_v24  ;;  %v769_v62 = vsub.f32 %v715_v43, %v2789_v6  ;;  %v2879_v24 = vmov 4294967295  }
 0x395   : > { %791 = vst [vmem:[#allocation2 + $0x8] sm:$0xff] %v783_v36  ;;  %v777_v59 = vmul.f32 %v769_v62, %v769_v62 }
 0x397   : > { %v785_v35 = vadd.f32 %v777_v59, %v665_v32  ;;  %v2889_v32 = vmov -inf  }
 0x399   : > { %793 = vst [vmem:[#allocation2 + $0x28] sm:$0xff] %v785_v35 }
 0x39a LB: >> { %v841_v47 = vld [vmem:[#allocation2 + $0x30] sm:$0xff]  ;;  %v842_v12 = vld [vmem:[#allocation2] sm:$0xff]  ;;  %vm865_vm6 = vcmp.gt.s32.totalorder %v2501_v1, %v2325_v45  ;;  %v843_v13 = vld [vmem:[#allocation2 + $0x18] sm:$0xff]  ;;  %vm866_vm10 = vcmp.gt.s32.totalorder %v2501_v1, %v2321_v46  ;;  %vm867_vm15 = vcmp.gt.s32.totalorder %v2501_v1, %v2317_v8  ;;  %s1563_s27 = smul.u32 24, %s2361_s26  ;;  %s824_s26 = sadd.s32 1, %s2361_s26   ;;  %s2361_s26 = sphi %s2903_s26, %s824_s26   ;;  %v2357_v17 = vphi %v2901_v17, %v3634_v17   ;;  %v2353_v41 = vphi %v2899_v41, %v3633_v41   ;;  %v2349_v53 = vphi %v2897_v53, %v3632_v53   ;;  %v2345_v30 = vphi %v2895_v30, %v3631_v30   ;;  %v2341_v26 = vphi %v2893_v26, %v3630_v26   ;;  %v2337_v19 = vphi %v2891_v19, %v3629_v19   ;;  %v2333_v32 = vphi %v2889_v32, %v3628_v32   ;;  %v2329_v57 = vphi %v2887_v57, %v3627_v57   ;;  %v2325_v45 = vphi %v2885_v45, %v3626_v45   ;;  %v2321_v46 = vphi %v2883_v46, %v3625_v46   ;;  %v2317_v8 = vphi %v2881_v8, %v3624_v8   ;;  %v2313_v24 = vphi %v2879_v24, %v3160_v24   ;;  %v2309_v28 = vphi %v2877_v28, %v3623_v28   ;;  %v2305_v42 = vphi %v2875_v42, %v3176_v42   ;;  %v2301_v20 = vphi %v2873_v20, %v3622_v20   ;;  %v2297_v52 = vphi %v2871_v52, %v3190_v52  }
 0x39b   : >> { %vm849_vm4 = vcmp.gt.f32.partialorder %v841_v47, %v2357_v17  ;;  %vm857_vm5 = vcmp.eq.f32.partialorder %v841_v47, %v2357_v17  ;;  %vm850_vm7 = vcmp.gt.f32.partialorder %v842_v12, %v2353_v41  ;;  %vm858_vm9 = vcmp.eq.f32.partialorder %v842_v12, %v2353_v41  ;;  %v844_v43 = vld [vmem:[#allocation2 + $0x10] sm:$0xff]  ;;  %v846_v62 = vld [vmem:[#allocation2 + $0x20] sm:$0xff]  ;;  %v848_v35 = vld [vmem:[#allocation2 + $0x38] sm:$0xff]  ;;  %p3345_p13 = scmp.ge.s32.totalorder %s824_s26, 8  }
 0x39c   : >> { %vm873_vm8 = vmand %vm857_vm5, %vm865_vm6  ;;  %vm851_vm13 = vcmp.gt.f32.partialorder %v843_v13, %v2349_v53  ;;  %vm859_vm14 = vcmp.eq.f32.partialorder %v843_v13, %v2349_v53  ;;  %v845_v36 = vld [vmem:[#allocation2 + $0x8] sm:$0xff]  ;;  %vm852_vm2 = vcmp.gt.f32.partialorder %v844_v43, %v2345_v30  ;;  %vm860_vm3 = vcmp.eq.f32.partialorder %v844_v43, %v2345_v30  ;;  %v3576_v56 = vld [vmem:[#allocation16_spill] sm:$0xff]  ;;  %s1564_s28 = scalar_lea.vmem %s2514_s20, %s1563_s27 [#allocation7]  ;;  %s1800_s5 = sshll.u32 (%p3345_p13), %s2417_s16, 7 }
 0x39d   : >> { %vm881_vm11 = vmor %vm849_vm4, %vm873_vm8  ;;  %vm868_vm5 = vcmp.gt.s32.totalorder %v2501_v1, %v2313_v24  ;;  %vm853_vm8 = vcmp.gt.f32.partialorder %v845_v36, %v2341_v26  ;;  %v3577_v51 = vld [vmem:[#allocation14_spill] sm:$0xff]  ;;  %v3578_v50 = vld [vmem:[#allocation13_spill] sm:$0xff]  ;;  %s3407_s11 = scalar_lea.hbm (%p3345_p13), %s3492_s2, %s1800_s5  ;;  %s1587_s30 = sshll.u32 (%p3345_p13), %s2512_s22, 4  ;;  %s3410_s30 = int_to_ptr.vmem [resolvable:$true] %s1587_s30 }
 0x39e   : >> { %v2934_v11 = vsel %vm881_vm11, %v841_v47, inf  ;;  %vm874_vm12 = vmand %vm858_vm9, %vm866_vm10  ;;  %vm861_vm9 = vcmp.eq.f32.partialorder %v845_v36, %v2341_v26  ;;  %vm869_vm10 = vcmp.gt.s32.totalorder %v2501_v1, %v2309_v28  ;;  %v3579_v61 = vld [vmem:[#allocation18_spill] sm:$0xff]  ;;  %v3580_v55 = vld [vmem:[#allocation15_spill] sm:$0xff]  ;;  %s1570_s4 = scalar_lea.sflag (%p3345_p13), [#allocation5], %s2489_s8  ;;  %s2083_s6 = scalar_lea.vmem (%p3345_p13), %s3410_s30, 384 }
 0x39f   : >> { %897 = vmin.xlane.f32.xlu0 %v2934_v11  ;;  %vm882_vm0 = vmor %vm850_vm7, %vm874_vm12  ;;  %vm854_vm12 = vcmp.gt.f32.partialorder %v846_v62, %v2337_v19  ;;  %v3581_v5 = vld [vmem:[#allocation21_spill] sm:$0xff]  ;;  %v3583_v54 = vld [vmem:[#allocation35_spill] sm:$0xff]  ;;  %p2084_p4 = scmp.ne.s32.totalorder (%p3345_p13), %s3410_s30, %s2083_s6  ;;  %p3635_p5 = scmp.ne.s32.totalorder (%p3345_p13), %s3535_s23, 0 }
 0x3a0   : >> { %v2938_v31 = vsel %vm882_vm0, %v842_v12, inf  ;;  %vm875_vm1 = vmand %vm859_vm14, %vm867_vm15  ;;  %v847_v59 = vld [vmem:[#allocation2 + $0x28] sm:$0xff]  ;;  %vm862_vm14 = vcmp.eq.f32.partialorder %v846_v62, %v2337_v19  ;;  %v3584_v0 = vld [vmem:[#allocation20_spill] sm:$0xff]  ;;  %s2371_s7 = smov (%p3345_p13), [#allocation6]  }
 0x3a1   : >> { %vm883_vm4 = vmor %vm851_vm13, %vm875_vm1  ;;  %vm870_vm13 = vcmp.gt.s32.totalorder %v2501_v1, %v2305_v42  ;;  %vm855_vm1 = vcmp.gt.f32.partialorder %v847_v59, %v2333_v32  ;;  %v3582_v60 = vld [vmem:[#allocation17_spill] sm:$0xff]  ;;  %v3585_v49 = vld [vmem:[#allocation28_spill] sm:$0xff]  ;;  %p2085_p7 = pnand (%p3345_p13), %p2084_p4, %p3635_p5  ;;  %s2087_s17 = sshll.u32 (%p3345_p13), %s2371_s7, 4  ;;  %s2088_s17 = int_to_ptr.vmem [resolvable:$false] %s2087_s17 }
 0x3a2   : >> { %v2941_v25 = vsel %vm883_vm4, %v843_v13, inf  ;;  %vm876_vm6 = vmand %vm860_vm3, %vm868_vm5  ;;  %vm863_vm3 = vcmp.eq.f32.partialorder %v847_v59, %v2333_v32  ;;  %vm871_vm5 = vcmp.gt.s32.totalorder %v2501_v1, %v2301_v20  ;;  %v3586_v18 = vld [vmem:[#allocation34_spill] sm:$0xff]  ;;  %v3587_v44 = vld [vmem:[#allocation27_spill] sm:$0xff]  ;;  %s2089_s19 = scalar_lea.vmem (%p3345_p13), %s2088_s17, 768  ;;  %p2090_p10 = scmp.lt.s32.totalorder (%p3345_p13), %s3410_s30, %s2088_s17 }
 0x3a3   : >> { %899 = vmin.xlane.f32.xlu0 %v2938_v31  ;;  %901 = vmin.xlane.f32.xlu1 %v2941_v25  ;;  %vm884_vm7 = vmor %vm852_vm2, %vm876_vm6  ;;  %vm856_vm6 = vcmp.gt.f32.partialorder %v848_v35, %v2329_v57  ;;  %v3588_v7 = vld [vmem:[#allocation37_spill] sm:$0xff]  ;;  %v3589_v2 = vld [vmem:[#allocation30_spill] sm:$0xff]  ;;  %p2086_p8 = pneg (%p3345_p13), %p2085_p7  ;;  %p2091_p1 = scmp.lt.s32.totalorder (%p3345_p13), %s2089_s19, %s2083_s6 }
 0x3a4   : >> { %v2946_v33 = vsel %vm884_vm7, %v844_v43, inf  ;;  %vm877_vm11 = vmand %vm861_vm9, %vm869_vm10  ;;  %vm872_vm9 = vcmp.gt.s32.totalorder %v2501_v1, %v2297_v52  ;;  %v3590_v48 = vld [vmem:[#allocation36_spill] sm:$0xff]  ;;  %v3591_v9 = vld [vmem:[#allocation29_spill] sm:$0xff] }
 0x3a5   : >> { %vm885_vm15 = vmor %vm853_vm8, %vm877_vm11  ;;  %vm864_vm8 = vcmp.eq.f32.partialorder %v848_v35, %v2329_v57  ;;  %v3592_v52 = vld [vmem:[#allocation39_spill] sm:$0xff]  ;;  %v3593_v8 = vld [vmem:[#allocation22_spill] sm:$0xff]  ;;  %p2092_p3 = por (%p3345_p13), %p2091_p1, %p2090_p10 }
 0x3a6   : >> { %v893_v24 = vsel %vm885_vm15, %v845_v36, inf  ;;  %vm878_vm0 = vmand %vm862_vm14, %vm870_vm13  ;;  %v3594_v46 = vld [vmem:[#allocation38_spill] sm:$0xff]  ;;  %v3595_v45 = vld [vmem:[#allocation33_spill] sm:$0xff] }
 0x3a7   : >> { %903 = vmin.xlane.f32.xlu1 %v2946_v33  ;;  %905 = vmin.xlane.f32.xlu0 %v893_v24  ;;  %vm886_vm2 = vmor %vm854_vm12, %vm878_vm0  ;;  %p2093_p9 = pnand (%p3345_p13), %p2092_p3, %p2086_p8 }
 0x3a8   : >> { %v2954_v28 = vsel %vm886_vm2, %v846_v62, inf  ;;  %vm879_vm4 = vmand %vm863_vm3, %vm871_vm5 }
 0x3a9   : >> { %vm887_vm10 = vmor %vm855_vm1, %vm879_vm4 }
 0x3aa   : >> { %v895_v42 = vsel %vm887_vm10, %v847_v59, inf  ;;  %vm880_vm7 = vmand %vm864_vm8, %vm872_vm9 }
 0x3ab   : >> { %907 = vmin.xlane.f32.xlu1 %v2954_v28  ;;  %909 = vmin.xlane.f32.xlu0 %v895_v42  ;;  %vm888_vm11 = vmor %vm856_vm6, %vm880_vm7 }
 0x3ac   : >> { %v2961_v20 = vsel %vm888_vm11, %v848_v35, inf }
 0x3af   : >> { %911 = vmin.xlane.f32.xlu1 %v2961_v20 }
 0x3c0   : >> { %1134 = vbcast.lane.b32.xlu1 %v3576_v56, 256 }
 0x3c1   : >> { %1127 = vbcast.lane.b32.xlu0 %v3577_v51, 256 }
 0x3c4   : >> { %1141 = vbcast.lane.b32.xlu1 %v3578_v50, 256 }
 0x3c5   : >> { %1155 = vbcast.lane.b32.xlu0 %v3579_v61, 256 }
 0x3c8   : >> { %1148 = vbcast.lane.b32.xlu1 %v3580_v55, 256 }
 0x3c9   : >> { %1200 = vbcast.lane.b32.xlu0 %v3581_v5, 256 }
 0x3cc   : >> { %1162 = vbcast.lane.b32.xlu1 %v3582_v60, 256 }
 0x3cd   : >> { %1273 = vbcast.lane.b32.xlu0 %v3583_v54, 256 }
 0x3d0   : >> { %1207 = vbcast.lane.b32.xlu1 %v3584_v0, 256 }
 0x3d1   : >> { %1214 = vbcast.lane.b32.xlu0 %v3585_v49, 256 }
 0x3d4   : >> { %1280 = vbcast.lane.b32.xlu1 %v3586_v18, 256 }
 0x3d5   : >> { %1221 = vbcast.lane.b32.xlu0 %v3587_v44, 256 }
 0x3d8   : >> { %1287 = vbcast.lane.b32.xlu1 %v3588_v7, 256 }
 0x3d9   : >> { %1228 = vbcast.lane.b32.xlu0 %v3589_v2, 256 }
 0x3dc   : >> { %1294 = vbcast.lane.b32.xlu1 %v3590_v48, 256 }
 0x3dd   : >> { %1235 = vbcast.lane.b32.xlu0 %v3591_v9, 256 }
 0x3e0   : >> { %1301 = vbcast.lane.b32.xlu1 %v3592_v52, 256 }
 0x3e1   : >> { %1169 = vbcast.lane.b32.xlu0 %v3593_v8, 256 }
 0x3e4   : >> { %1308 = vbcast.lane.b32.xlu1 %v3594_v46, 256 }
 0x3e8   : >> { %1242 = vbcast.lane.b32.xlu1 %v3595_v45, 256 }
 0x428   : >> { %v2984_v17 = vpop.xlane.xlu0 %897  }
 0x429   : >> { %3596 = vst [vmem:[#allocation42_spill] sm:$0xff] %v2984_v17  ;;  %vm913_vm12 = vcmp.eq.f32.partialorder %v2934_v11, %v2984_v17 }
 0x42a   : >> { %v2989_v57 = vsel %vm913_vm12, %v2501_v1, 128 }
 0x42b   : >> { %v930_v32 = vshra.s32 %v2989_v57, 16  ;;  %v929_v60 = vand.u32 65535, %v2989_v57 }
 0x42c   : >> { %v2992_v41 = vpop.xlane.xlu0 %899   ;;  %v2994_v53 = vpop.xlane.xlu1 %901  }
 0x42d   : >> { %3597 = vst [vmem:[#allocation43_spill] sm:$0xff] %v2992_v41  ;;  %3598 = vst [vmem:[#allocation44_spill] sm:$0xff] %v2994_v53  ;;  %vm914_vm14 = vcmp.eq.f32.partialorder %v2938_v31, %v2992_v41  ;;  %vm915_vm13 = vcmp.eq.f32.partialorder %v2941_v25, %v2994_v53  ;;  %v3000_v19 = vcvt.s32.f32 %v930_v32  ;;  %v931_v17 = vcvt.s32.f32 %v929_v60 }
 0x42e   : >> { %v3003_v26 = vsel %vm914_vm14, %v2501_v1, 128  ;;  %v3006_v30 = vsel %vm915_vm13, %v2501_v1, 128 }
 0x42f   : >> { %v944_v47 = vshra.s32 %v3003_v26, 16  ;;  %v958_v12 = vshra.s32 %v3006_v30, 16  ;;  %933 = vmin.xlane.f32.xlu0 %v3000_v19  ;;  %v943_v53 = vand.u32 65535, %v3003_v26 }
 0x430   : >> { %v3011_v13 = vpop.xlane.xlu1 %903   ;;  %v3013_v43 = vpop.xlane.xlu0 %905  }
 0x431   : >> { %3599 = vst [vmem:[#allocation45_spill] sm:$0xff] %v3011_v13  ;;  %3600 = vst [vmem:[#allocation46_spill] sm:$0xff] %v3013_v43  ;;  %vm916_vm15 = vcmp.eq.f32.partialorder %v2946_v33, %v3011_v13  ;;  %vm917_vm0 = vcmp.eq.f32.partialorder %v893_v24, %v3013_v43  ;;  %v3024_v31 = vcvt.s32.f32 %v958_v12  ;;  %v3026_v62 = vcvt.s32.f32 %v944_v47 }
 0x432   : >> { %v3019_v11 = vsel %vm916_vm15, %v2501_v1, 128  ;;  %v3022_v36 = vsel %vm917_vm0, %v2501_v1, 128  ;;  %v957_v13 = vand.u32 65535, %v3006_v30 }
 0x433   : >> { %v972_v25 = vshra.s32 %v3019_v11, 16  ;;  %v986_v59 = vshra.s32 %v3022_v36, 16  ;;  %961 = vmin.xlane.f32.xlu0 %v3024_v31  ;;  %947 = vmin.xlane.f32.xlu1 %v3026_v62  ;;  %v985_v57 = vand.u32 65535, %v3022_v36 }
 0x434   : >> { %v3032_v33 = vpop.xlane.xlu1 %907   ;;  %v3034_v32 = vpop.xlane.xlu0 %909  }
 0x435   : >> { %3601 = vst [vmem:[#allocation47_spill] sm:$0xff] %v3032_v33  ;;  %3602 = vst [vmem:[#allocation48_spill] sm:$0xff] %v3034_v32  ;;  %vm918_vm1 = vcmp.eq.f32.partialorder %v2954_v28, %v3032_v33  ;;  %vm919_vm3 = vcmp.eq.f32.partialorder %v895_v42, %v3034_v32  ;;  %v3045_v52 = vcvt.s32.f32 %v986_v59  ;;  %v3047_v8 = vcvt.s32.f32 %v972_v25 }
 0x436   : >> { %v3040_v35 = vsel %vm918_vm1, %v2501_v1, 128  ;;  %v3043_v24 = vsel %vm919_vm3, %v2501_v1, 128  ;;  %v945_v32 = vcvt.s32.f32 %v943_v53 }
 0x437   : >> { %v1000_v46 = vshra.s32 %v3040_v35, 16  ;;  %v1014_v45 = vshra.s32 %v3043_v24, 16  ;;  %989 = vmin.xlane.f32.xlu0 %v3045_v52  ;;  %975 = vmin.xlane.f32.xlu1 %v3047_v8  ;;  %v1013_v53 = vand.u32 65535, %v3043_v24 }
 0x438   : >> { %v3053_v28 = vpop.xlane.xlu1 %911  }
 0x439   : >> { %3603 = vst [vmem:[#allocation49_spill] sm:$0xff] %v3053_v28  ;;  %v3604_v47 = vmov %v3053_v28  ;;  %v3057_v42 = vcvt.s32.f32 %v1014_v45  ;;  %v3062_v25 = vcvt.s32.f32 %v1000_v46  ;;  %v3605_v28 = vld [vmem:[#allocation19_spill] sm:$0xff]  ;;  %v3076_v46 = vpop.permute.xlu0 %1127 }
 0x43a   : >> { %vm920_vm5 = vcmp.eq.f32.partialorder %v2961_v20, %v3604_v47  ;;  %v3606_v20 = vld [vmem:[#allocation41_spill] sm:$0xff]  ;;  %v959_v47 = vcvt.s32.f32 %v957_v13 }
 0x43b   : >> { %v3060_v12 = vsel %vm920_vm5, %v2501_v1, 128  ;;  %1017 = vmin.xlane.f32.xlu0 %v3057_v42  ;;  %1003 = vmin.xlane.f32.xlu1 %v3062_v25 }
 0x43c   : >> { %v1028_v59 = vshra.s32 %v3060_v12, 16  ;;  %v3072_v45 = vpop.permute.xlu1 %1134 }
 0x43d   : >> { %v3080_v7 = vpop.permute.xlu0 %1155 }
 0x43e   : >> { %v3067_v0 = vcvt.s32.f32 %v1028_v59 }
 0x440   : >> { %1031 = vmin.xlane.f32.xlu1 %v3067_v0  ;;  %v3074_v2 = vpop.permute.xlu1 %1141 }
 0x441   : >> { %v3084_v59 = vpop.permute.xlu0 %1200 }
 0x444   : >> { %v3078_v5 = vpop.permute.xlu1 %1148 }
 0x445   : >> { %v3088_v44 = vpop.permute.xlu0 %1273 }
 0x448   : >> { %v3082_v9 = vpop.permute.xlu1 %1162 }
 0x44c   : >> { %v3086_v18 = vpop.permute.xlu1 %1207 }
 0x451   : >> { %1176 = vbcast.lane.b32.xlu1 %v3605_v28, 256  ;;  %1315 = vbcast.lane.b32.xlu0 %v3606_v20, 256  ;;  %v3090_v28 = vpop.permute.xlu1 %1280  ;;  %v3092_v20 = vpop.permute.xlu0 %1214 }
 0x455   : >> { %v3094_v48 = vpop.permute.xlu1 %1287  ;;  %v3096_v49 = vpop.permute.xlu0 %1221 }
 0x459   : >> { %v3098_v50 = vpop.permute.xlu1 %1294  ;;  %v3100_v51 = vpop.permute.xlu0 %1228 }
 0x45d   : >> { %v3102_v54 = vpop.permute.xlu1 %1301  ;;  %v3104_v55 = vpop.permute.xlu0 %1235 }
 0x45e   : >> { %3607 = vst [vmem:[#allocation50_spill] sm:$0xff] %v3102_v54 }
 0x461   : >> { %v3106_v56 = vpop.permute.xlu1 %1308  ;;  %v3109_v61 = vpop.permute.xlu0 %1169 }
 0x462   : >> { %3608 = vst [vmem:[#allocation51_spill] sm:$0xff] %v3106_v56  ;;  %3609 = vst [vmem:[#allocation52_spill] sm:$0xff] %v3109_v61  ;;  %v971_v56 = vand.u32 65535, %v3019_v11 }
 0x464   : >> { %v973_v30 = vcvt.s32.f32 %v971_v56 }
 0x465   : >> { %v3113_v43 = vpop.permute.xlu1 %1242 }
 0x4b8   : >> { %v934_v41 = vpop.xlane.xlu0 %933 }
 0x4b9   : >> { %vm935_vm2 = vcmp.eq.f32.partialorder %v3000_v19, %v934_v41  ;;  %v987_v19 = vcvt.s32.f32 %v985_v57 }
 0x4ba   : >> { %v936_v33 = vsel %vm935_vm2, %v931_v17, inf  ;;  %v999_v17 = vand.u32 65535, %v3040_v35  ;;  %vm1532_vm2 = vcmask 1041409  }
 0x4bb   : >> { %937 = vmin.xlane.f32.xlu0 %v936_v33  ;;  %v1027_v33 = vand.u32 65535, %v3060_v12 }
 0x4bc   : >> { %v962_v54 = vpop.xlane.xlu0 %961  ;;  %v948_v61 = vpop.xlane.xlu1 %947 }
 0x4bd   : >> { %vm963_vm4 = vcmp.eq.f32.partialorder %v3024_v31, %v962_v54  ;;  %vm949_vm6 = vcmp.eq.f32.partialorder %v3026_v62, %v948_v61  ;;  %v1001_v62 = vcvt.s32.f32 %v999_v17 }
 0x4be   : >> { %v964_v60 = vsel %vm963_vm4, %v959_v47, inf  ;;  %v950_v26 = vsel %vm949_vm6, %v945_v32, inf  ;;  %v1015_v32 = vcvt.s32.f32 %v1013_v53  ;;  %vm1534_vm4 = vcmask 1042434  }
 0x4bf   : >> { %965 = vmin.xlane.f32.xlu0 %v964_v60  ;;  %951 = vmin.xlane.f32.xlu1 %v950_v26  ;;  %v3610_v60 = vld [vmem:[#allocation40_spill] sm:$0xff]  ;;  %vm1536_vm6 = vcmask 1043459  }
 0x4c0   : >> { %v990_v13 = vpop.xlane.xlu0 %989  ;;  %v976_v11 = vpop.xlane.xlu1 %975  ;;  %v3611_v26 = vld [vmem:[#allocation32_spill] sm:$0xff] }
 0x4c1   : >> { %vm991_vm8 = vcmp.eq.f32.partialorder %v3045_v52, %v990_v13  ;;  %vm977_vm9 = vcmp.eq.f32.partialorder %v3047_v8, %v976_v11  ;;  %v1029_v52 = vcvt.s32.f32 %v1027_v33 }
 0x4c2   : >> { %v992_v36 = vsel %vm991_vm8, %v987_v19, inf  ;;  %v978_v31 = vsel %vm977_vm9, %v973_v30, inf  ;;  %v940_v30 = vcvt.f32.s32 %v934_v41  ;;  %vm1538_vm8 = vcmask 1044484  }
 0x4c3   : >> { %993 = vmin.xlane.f32.xlu0 %v992_v36  ;;  %979 = vmin.xlane.f32.xlu1 %v978_v31  ;;  %v954_v36 = vcvt.f32.s32 %v948_v61  ;;  %vm1540_vm9 = vcmask 1045509  }
 0x4c4   : >> { %v1018_v56 = vpop.xlane.xlu0 %1017  ;;  %v1004_v47 = vpop.xlane.xlu1 %1003  ;;  %v941_v19 = vshll.u32 %v940_v30, 16 }
 0x4c5   : >> { %vm1019_vm10 = vcmp.eq.f32.partialorder %v3057_v42, %v1018_v56  ;;  %vm1005_vm7 = vcmp.eq.f32.partialorder %v3062_v25, %v1004_v47  ;;  %v968_v25 = vcvt.f32.s32 %v962_v54 }
 0x4c6   : >> { %v1020_v35 = vsel %vm1019_vm10, %v1015_v32, inf  ;;  %v1006_v24 = vsel %vm1005_vm7, %v1001_v62, inf  ;;  %v982_v32 = vcvt.f32.s32 %v976_v11  ;;  %vm1542_vm10 = vcmask 1046534  }
 0x4c7   : >> { %1021 = vmin.xlane.f32.xlu0 %v1020_v35  ;;  %1007 = vmin.xlane.f32.xlu1 %v1006_v24  ;;  %v969_v62 = vshll.u32 %v968_v25, 16  ;;  %v955_v24 = vshll.u32 %v954_v36, 16  ;;  %v3612_v36 = vld [vmem:[#allocation23_spill] sm:$0xff]  ;;  %vm1544_vm7 = vcmask 1047559  }
 0x4c8   : >> { %v3130_v12 = vpop.permute.xlu0 %1315  ;;  %v983_v11 = vshll.u32 %v982_v32, 16 }
 0x4c9   : >> { %v1032_v8 = vpop.xlane.xlu1 %1031 }
 0x4ca   : >> { %vm1033_vm11 = vcmp.eq.f32.partialorder %v3067_v0, %v1032_v8  ;;  %v996_v0 = vcvt.f32.s32 %v990_v13  ;;  %v1038_v32 = vcvt.f32.s32 %v1032_v8 }
 0x4cb   : >> { %v1034_v57 = vsel %vm1033_vm11, %v1029_v52, inf  ;;  %vm1565_vm11 = vcmask 64512  }
 0x4cc   : >> { %1035 = vmin.xlane.f32.xlu1 %v1034_v57  ;;  %v997_v13 = vshll.u32 %v996_v0, 16 }
 0x4cd   : >> { %v3132_v17 = vpop.permute.xlu1 %1176 }
 0x4dd   : >> { %1322 = vbcast.lane.b32.xlu1 %v3610_v60, 256  ;;  %1249 = vbcast.lane.b32.xlu0 %v3611_v26, 256  ;;  %v1024_v60 = vcvt.f32.s32 %v1018_v56  ;;  %v1010_v26 = vcvt.f32.s32 %v1004_v47 }
 0x4df   : >> { %v1011_v0 = vshll.u32 %v1010_v26, 16  ;;  %v1039_v26 = vshll.u32 %v1038_v32, 16  ;;  %v3615_v32 = vld [vmem:[#allocation25_spill] sm:$0xff] }
 0x544   : >> { %v938_v42 = vpop.xlane.xlu0 %937 }
 0x545   : >> { %v939_v53 = vcvt.f32.s32 %v938_v42 }
 0x547   : >> { %v3134_v31 = vadd.s32 %v941_v19, %v939_v53  }
 0x548   : >> { %v966_v33 = vpop.xlane.xlu0 %965  ;;  %v952_v35 = vpop.xlane.xlu1 %951 }
 0x549   : >> { %vm1041_vm12 = vcmp.eq.s32.totalorder %v2501_v1, %v3134_v31  ;;  %v967_v52 = vcvt.f32.s32 %v966_v33  ;;  %v953_v41 = vcvt.f32.s32 %v952_v35 }
 0x54a   : >> { %v1049_v54 = vsel %vm1041_vm12, %v2663_v16, 0.0 }
 0x54b   : >> { %1057 = vadd.xlane.f32.xlu0 %v1049_v54  ;;  %v3142_v61 = vadd.s32 %v969_v62, %v967_v52   ;;  %v3144_v57 = vadd.s32 %v955_v24, %v953_v41   ;;  %v1025_v62 = vshll.u32 %v1024_v60, 16 }
 0x54c   : >> { %v994_v30 = vpop.xlane.xlu0 %993  ;;  %v980_v42 = vpop.xlane.xlu1 %979 }
 0x54d   : >> { %v995_v19 = vcvt.f32.s32 %v994_v30  ;;  %v981_v25 = vcvt.f32.s32 %v980_v42  ;;  %vm1043_vm14 = vcmp.eq.s32.totalorder %v2501_v1, %v3142_v61  ;;  %vm1042_vm13 = vcmp.eq.s32.totalorder %v2501_v1, %v3144_v57 }
 0x54e   : >> { %v1051_v53 = vsel %vm1043_vm14, %v2672_v22, 0.0  ;;  %v1050_v56 = vsel %vm1042_vm13, %v3612_v36, 0.0  ;;  %v3614_v36 = vld [vmem:[#allocation24_spill] sm:$0xff] }
 0x54f   : >> { %v3158_v47 = vadd.s32 %v997_v13, %v995_v19   ;;  %v3160_v24 = vadd.s32 %v983_v11, %v981_v25   ;;  %1061 = vadd.xlane.f32.xlu0 %v1051_v53  ;;  %1059 = vadd.xlane.f32.xlu1 %v1050_v56  ;;  %v3613_v13 = vld [vmem:[#allocation26_spill] sm:$0xff]  ;;  %v2370_v19 = vmov 0   ;;  %v1073_v56 = vsel %vm1041_vm12, %v3614_v36, 0.0 }
 0x550   : >> { %v1022_v33 = vpop.xlane.xlu0 %1021  ;;  %v1008_v35 = vpop.xlane.xlu1 %1007  ;;  %2053 = vset.pattern.permute.xlu0 %v2370_v19  ;;  %2054 = vset.pattern.permute.xlu1 %v2370_v19  ;;  %v1098_v19 = vsel %vm1042_vm13, %v2743_v15, 0.0 }
 0x551   : >> { %v1023_v52 = vcvt.f32.s32 %v1022_v33  ;;  %v1009_v41 = vcvt.f32.s32 %v1008_v35  ;;  %vm1045_vm15 = vcmp.eq.s32.totalorder %v2501_v1, %v3158_v47  ;;  %vm1044_vm0 = vcmp.eq.s32.totalorder %v2501_v1, %v3160_v24 }
 0x552   : >> { %v1053_v54 = vsel %vm1045_vm15, %v2668_v3, 0.0  ;;  %v1052_v8 = vsel %vm1044_vm0, %v3613_v13, 0.0  ;;  %v1074_v33 = vsel %vm1042_vm13, %v3615_v32, 0.0  ;;  %v1077_v35 = vsel %vm1045_vm15, %v2720_v63, 0.0  ;;  %v3616_v13 = vld [vmem:[#allocation31_spill] sm:$0xff] }
 0x553   : >> { %v3174_v11 = vadd.s32 %v1025_v62, %v1023_v52   ;;  %v3176_v42 = vadd.s32 %v1011_v0, %v1009_v41   ;;  %1065 = vadd.xlane.f32.xlu0 %v1053_v54  ;;  %1063 = vadd.xlane.f32.xlu1 %v1052_v8  ;;  %v1075_v0 = vsel %vm1043_vm14, %v2704_v38, 0.0  ;;  %v1076_v41 = vsel %vm1044_vm0, %v2701_v37, 0.0 }
 0x555   : >> { %v1036_v60 = vpop.xlane.xlu1 %1035  ;;  %vm1047_vm1 = vcmp.eq.s32.totalorder %v2501_v1, %v3174_v11  ;;  %vm1046_vm3 = vcmp.eq.s32.totalorder %v2501_v1, %v3176_v42 }
 0x556   : >> { %v1037_v30 = vcvt.f32.s32 %v1036_v60  ;;  %v1055_v25 = vsel %vm1047_vm1, %v2684_v29, 0.0  ;;  %v1054_v53 = vsel %vm1046_vm3, %v2681_v27, 0.0  ;;  %v1079_v54 = vsel %vm1047_vm1, %v2740_v14, 0.0 }
 0x557   : >> { %1069 = vadd.xlane.f32.xlu0 %v1055_v25  ;;  %1067 = vadd.xlane.f32.xlu1 %v1054_v53  ;;  %v1078_v8 = vsel %vm1046_vm3, %v3616_v13, 0.0  ;;  %v1097_v60 = vsel %vm1041_vm12, %v2732_v10, 0.0  ;;  %v1101_v25 = vsel %vm1045_vm15, %v2770_v39, 0.0  ;;  %v1100_v53 = vsel %vm1044_vm0, %v2752_v21, 0.0 }
 0x558   : >> { %v3190_v52 = vadd.s32 %v1039_v26, %v1037_v30   ;;  %v1099_v30 = vsel %vm1043_vm14, %v2755_v23, 0.0  ;;  %v1103_v36 = vsel %vm1047_vm1, %v2789_v6, 0.0 }
 0x55a   : >> { %vm1048_vm5 = vcmp.eq.s32.totalorder %v2501_v1, %v3190_v52 }
 0x55b   : >> { %v1056_v62 = vsel %vm1048_vm5, %v2695_v34, 0.0  ;;  %1081 = vadd.xlane.f32.xlu0 %v1073_v56  ;;  %v1080_v26 = vsel %vm1048_vm5, %v2749_v4, 0.0  ;;  %v1102_v56 = vsel %vm1046_vm3, %v2773_v40, 0.0 }
 0x55c   : >> { %1071 = vadd.xlane.f32.xlu1 %v1056_v62  ;;  %v1104_v62 = vsel %vm1048_vm5, %v2786_v58, 0.0 }
 0x55f   : >> { %1085 = vadd.xlane.f32.xlu0 %v1075_v0  ;;  %v3262_v0 = vpop.permute.xlu0 %1249 }
 0x560   : >> { %1083 = vadd.xlane.f32.xlu1 %v1074_v33  ;;  %v3264_v33 = vpop.permute.xlu1 %1322 }
 0x563   : >> { %1089 = vadd.xlane.f32.xlu0 %v1077_v35 }
 0x564   : >> { %1087 = vadd.xlane.f32.xlu1 %v1076_v41 }
 0x567   : >> { %1093 = vadd.xlane.f32.xlu0 %v1079_v54 }
 0x568   : >> { %1091 = vadd.xlane.f32.xlu1 %v1078_v8 }
 0x56b   : >> { %1105 = vadd.xlane.f32.xlu0 %v1097_v60 }
 0x56c   : >> { %1095 = vadd.xlane.f32.xlu1 %v1080_v26 }
 0x56f   : >> { %1109 = vadd.xlane.f32.xlu0 %v1099_v30 }
 0x570   : >> { %1107 = vadd.xlane.f32.xlu1 %v1098_v19 }
 0x573   : >> { %1113 = vadd.xlane.f32.xlu0 %v1101_v25 }
 0x574   : >> { %1111 = vadd.xlane.f32.xlu1 %v1100_v53 }
 0x577   : >> { %1117 = vadd.xlane.f32.xlu0 %v1103_v36 }
 0x578   : >> { %1115 = vadd.xlane.f32.xlu1 %v1102_v56 }
 0x57c   : >> { %1119 = vadd.xlane.f32.xlu1 %v1104_v62 }
 0x5d4   : >> { %v1058_v32 = vpop.xlane.xlu0 %1057 }
 0x5d5   : >> { %v1186_v35 = vsub.f32 %v1058_v32, %v3076_v46 }
 0x5d7   : >> { %1365 = vperm.xlu0 %2053, %v1186_v35  }
 0x5d8   : >> { %v1062_v41 = vpop.xlane.xlu0 %1061  ;;  %v1060_v54 = vpop.xlane.xlu1 %1059 }
 0x5d9   : >> { %v1187_v13 = vsub.f32 %v1060_v54, %v3072_v45  ;;  %v1188_v26 = vsub.f32 %v1062_v41, %v3074_v2 }
 0x5db   : >> { %1368 = vperm.xlu1 %2054, %v1187_v13  }
 0x5dc   : >> { %v1066_v8 = vpop.xlane.xlu0 %1065  ;;  %v1064_v60 = vpop.xlane.xlu1 %1063 }
 0x5dd   : >> { %v1189_v30 = vsub.f32 %v1064_v60, %v3078_v5  ;;  %v1190_v53 = vsub.f32 %v1066_v8, %v3080_v7 }
 0x5df   : >> { %1371 = vperm.xlu1 %2054, %v1188_v26   ;;  %1374 = vperm.xlu0 %2053, %v1189_v30  }
 0x5e0   : >> { %v1070_v19 = vpop.xlane.xlu0 %1069  ;;  %v1068_v25 = vpop.xlane.xlu1 %1067 }
 0x5e1   : >> { %v1191_v46 = vsub.f32 %v1068_v25, %v3082_v9 }
 0x5e3   : >> { %1377 = vperm.xlu1 %2054, %v1190_v53   ;;  %1380 = vperm.xlu0 %2053, %v1191_v46  }
 0x5e4   : >> { %v1082_v36 = vpop.xlane.xlu0 %1081 }
 0x5e5   : >> { %v1072_v56 = vpop.xlane.xlu1 %1071  ;;  %v1259_v45 = vsub.f32 %v1082_v36, %v3084_v59 }
 0x5e7   : >> { %1389 = vperm.xlu1 %2054, %v1259_v45  }
 0x5e8   : >> { %v1086_v62 = vpop.xlane.xlu0 %1085 }
 0x5e9   : >> { %v1084_v32 = vpop.xlane.xlu1 %1083  ;;  %v1261_v60 = vsub.f32 %v1086_v62, %v3092_v20 }
 0x5ea   : >> { %v1260_v2 = vsub.f32 %v1084_v32, %v3086_v18 }
 0x5ec   : >> { %1392 = vperm.xlu0 %2053, %v1260_v2   ;;  %v1090_v5 = vpop.xlane.xlu0 %1089 }
 0x5ed   : >> { %v1088_v35 = vpop.xlane.xlu1 %1087  ;;  %v1263_v53 = vsub.f32 %v1090_v5, %v3100_v51 }
 0x5ee   : >> { %v1262_v18 = vsub.f32 %v1088_v35, %v3096_v49  ;;  %v3618_v49 = vld [vmem:[#allocation52_spill] sm:$0xff] }
 0x5ef   : >> { %v1192_v62 = vsub.f32 %v1070_v19, %v3618_v49 }
 0x5f0   : >> { %v1094_v41 = vpop.xlane.xlu0 %1093 }
 0x5f1   : >> { %v1092_v54 = vpop.xlane.xlu1 %1091  ;;  %v1265_v51 = vsub.f32 %v1094_v41, %v3113_v43 }
 0x5f2   : >> { %v1264_v20 = vsub.f32 %v1092_v54, %v3104_v55  ;;  %v1193_v55 = vsub.f32 %v1072_v56, %v3132_v17 }
 0x5f4   : >> { %v1106_v13 = vpop.xlane.xlu0 %1105 }
 0x5f5   : >> { %v1096_v7 = vpop.xlane.xlu1 %1095  ;;  %v1332_v9 = vsub.f32 %v1106_v13, %v3088_v44 }
 0x5f6   : >> { %v1266_v5 = vsub.f32 %v1096_v7, %v3262_v0 }
 0x5f7   : >> { %1413 = vperm.xlu1 %2054, %v1332_v9  }
 0x5f8   : >> { %v1110_v26 = vpop.xlane.xlu0 %1109 }
 0x5f9   : >> { %v1108_v8 = vpop.xlane.xlu1 %1107  ;;  %v1334_v30 = vsub.f32 %v1110_v26, %v3094_v48  ;;  %v3619_v48 = vld [vmem:[#allocation51_spill] sm:$0xff] }
 0x5fa   : >> { %v1333_v59 = vsub.f32 %v1108_v8, %v3090_v28  ;;  %v3617_v28 = vld [vmem:[#allocation50_spill] sm:$0xff] }
 0x5fb   : >> { %1395 = vperm.xlu1 %2054, %v1261_v60  }
 0x5fc   : >> { %1416 = vperm.xlu0 %2053, %v1333_v59   ;;  %v1114_v46 = vpop.xlane.xlu0 %1113 }
 0x5fd   : >> { %v1112_v25 = vpop.xlane.xlu1 %1111  ;;  %v1336_v36 = vsub.f32 %v1114_v46, %v3617_v28 }
 0x5fe   : >> { %v1335_v44 = vsub.f32 %v1112_v25, %v3098_v50 }
 0x5ff   : >> { %1398 = vperm.xlu1 %2054, %v1262_v18  }
 0x600   : >> { %1419 = vperm.xlu0 %2053, %v1334_v30   ;;  %v1118_v2 = vpop.xlane.xlu0 %1117  ;;  %v3620_v30 = vld [vmem:[#allocation12_spill] sm:$0xff] }
 0x601   : >> { %v1116_v45 = vpop.xlane.xlu1 %1115  ;;  %v1338_v50 = vsub.f32 %v1118_v2, %v3130_v12  ;;  %v3292_v25 = vsub.s32 %v2501_v1, %v3620_v30 }
 0x602   : >> { %v1337_v32 = vsub.f32 %v1116_v45, %v3619_v48 }
 0x603   : >> { %1401 = vperm.xlu1 %2054, %v1263_v53  }
 0x604   : >> { %1422 = vperm.xlu0 %2053, %v1335_v44  }
 0x605   : >> { %v1120_v35 = vpop.xlane.xlu1 %1119 }
 0x606   : >> { %v1339_v19 = vsub.f32 %v1120_v35, %v3264_v33 }
 0x607   : >> { %1404 = vperm.xlu1 %2054, %v1264_v20  }
 0x608   : >> { %1425 = vperm.xlu0 %2053, %v1336_v36  }
 0x60b   : >> { %1383 = vperm.xlu1 %2054, %v1192_v62  }
 0x60c   : >> { %1428 = vperm.xlu0 %2053, %v1337_v32  }
 0x60f   : >> { %1431 = vperm.xlu1 %2054, %v1338_v50  }
 0x610   : >> { %1407 = vperm.xlu0 %2053, %v1265_v51  }
 0x613   : >> { %1410 = vperm.xlu1 %2054, %v1266_v5  }
 0x614   : >> { %1386 = vperm.xlu0 %2053, %v1193_v55  }
 0x618   : >> { %1434 = vperm.xlu0 %2053, %v1339_v19  }
 0x652   : >> { %v1366_v9 = vpop.permute.xlu0 %1365 }
 0x653   : >> { %v1439_v20 = vrot.slane %v1366_v9, %v3292_v25 }
 0x656   : >> { %v1369_v54 = vpop.permute.xlu1 %1368 }
 0x657   : >> { %v1443_v33 = vrot.slane %v1369_v54, %v3292_v25 }
 0x659   : >> { %v1533_v28 = vsel %vm1532_vm2, %v1443_v33, %v1439_v20 }
 0x65a   : >> { %v1372_v13 = vpop.permute.xlu1 %1371  ;;  %v1375_v8 = vpop.permute.xlu0 %1374 }
 0x65b   : >> { %v1447_v46 = vrot.slane %v1372_v13, %v3292_v25  ;;  %v1451_v36 = vrot.slane %v1375_v8, %v3292_v25 }
 0x65d   : >> { %v1535_v62 = vsel %vm1534_vm4, %v1447_v46, %v1533_v28 }
 0x65e   : >> { %v1378_v60 = vpop.permute.xlu1 %1377  ;;  %v1381_v43 = vpop.permute.xlu0 %1380  ;;  %v1537_v5 = vsel %vm1536_vm6, %v1451_v36, %v1535_v62 }
 0x65f   : >> { %v1455_v48 = vrot.slane %v1378_v60, %v3292_v25  ;;  %v1459_v55 = vrot.slane %v1381_v43, %v3292_v25 }
 0x661   : >> { %v1539_v9 = vsel %vm1538_vm8, %v1455_v48, %v1537_v5 }
 0x662   : >> { %v1390_v41 = vpop.permute.xlu1 %1389 }
 0x663   : >> { %v1471_v51 = vrot.slane %v1390_v41, %v3292_v25 }
 0x667   : >> { %v1393_v12 = vpop.permute.xlu0 %1392 }
 0x668   : >> { %v1475_v32 = vrot.slane %v1393_v12, %v3292_v25 }
 0x66a   : >> { %v1546_v8 = vsel %vm1532_vm2, %v1475_v32, %v1471_v51 }
 0x672   : >> { %v1414_v59 = vpop.permute.xlu1 %1413 }
 0x673   : >> { %v1503_v60 = vrot.slane %v1414_v59, %v3292_v25 }
 0x676   : >> { %v1396_v18 = vpop.permute.xlu1 %1395 }
 0x677   : >> { %v1417_v26 = vpop.permute.xlu0 %1416  ;;  %v1479_v2 = vrot.slane %v1396_v18, %v3292_v25 }
 0x678   : >> { %v1507_v35 = vrot.slane %v1417_v26, %v3292_v25 }
 0x679   : >> { %v1547_v12 = vsel %vm1534_vm4, %v1479_v2, %v1546_v8  ;;  %v3624_v8 = vmov %v3142_v61 }
 0x67a   : >> { %v1399_v56 = vpop.permute.xlu1 %1398  ;;  %v1553_v59 = vsel %vm1532_vm2, %v1507_v35, %v1503_v60 }
 0x67b   : >> { %v1420_v17 = vpop.permute.xlu0 %1419  ;;  %v1483_v50 = vrot.slane %v1399_v56, %v3292_v25 }
 0x67c   : >> { %v1511_v43 = vrot.slane %v1420_v17, %v3292_v25 }
 0x67d   : >> { %v1548_v56 = vsel %vm1536_vm6, %v1483_v50, %v1547_v12 }
 0x67e   : >> { %v1402_v7 = vpop.permute.xlu1 %1401 }
 0x67f   : >> { %v1423_v0 = vpop.permute.xlu0 %1422  ;;  %v1487_v19 = vrot.slane %v1402_v7, %v3292_v25 }
 0x680   : >> { %v1515_v7 = vrot.slane %v1423_v0, %v3292_v25 }
 0x681   : >> { %v1549_v30 = vsel %vm1538_vm8, %v1487_v19, %v1548_v56 }
 0x682   : >> { %v1405_v44 = vpop.permute.xlu1 %1404 }
 0x683   : >> { %v1426_v53 = vpop.permute.xlu0 %1425  ;;  %v1491_v41 = vrot.slane %v1405_v44, %v3292_v25  ;;  %v1541_v44 = vsel %vm1540_vm9, %v1459_v55, %v1539_v9 }
 0x684   : >> { %v1519_v33 = vrot.slane %v1426_v53, %v3292_v25 }
 0x685   : >> { %v1550_v20 = vsel %vm1540_vm9, %v1491_v41, %v1549_v30  ;;  %v3631_v30 = vld [vmem:[#allocation45_spill] sm:$0xff]  ;;  %v3633_v41 = vld [vmem:[#allocation43_spill] sm:$0xff] }
 0x686   : >> { %v1384_v49 = vpop.permute.xlu1 %1383 }
 0x687   : >> { %v1429_v45 = vpop.permute.xlu0 %1428  ;;  %v1463_v26 = vrot.slane %v1384_v49, %v3292_v25  ;;  %v1554_v49 = vsel %vm1534_vm4, %v1511_v43, %v1553_v59 }
 0x688   : >> { %v1523_v28 = vrot.slane %v1429_v45, %v3292_v25  ;;  %v1555_v32 = vsel %vm1536_vm6, %v1515_v7, %v1554_v49 }
 0x689   : >> { %v1543_v62 = vsel %vm1542_vm10, %v1463_v26, %v1541_v44  ;;  %v1556_v45 = vsel %vm1538_vm8, %v1519_v33, %v1555_v32  ;;  %v3628_v32 = vld [vmem:[#allocation48_spill] sm:$0xff]  ;;  %v3630_v26 = vld [vmem:[#allocation46_spill] sm:$0xff] }
 0x68a   : >> { %v1432_v13 = vpop.permute.xlu1 %1431  ;;  %v1557_v55 = vsel %vm1540_vm9, %v1523_v28, %v1556_v45  ;;  %v3623_v28 = vmov %v3158_v47  ;;  %v3626_v45 = vmov %v3134_v31 }
 0x68b   : >> { %v1408_v54 = vpop.permute.xlu0 %1407  ;;  %v1527_v53 = vrot.slane %v1432_v13, %v3292_v25 }
 0x68c   : >> { %v1495_v18 = vrot.slane %v1408_v54, %v3292_v25 }
 0x68d   : >> { %v1558_v35 = vsel %vm1542_vm10, %v1527_v53, %v1557_v55  ;;  %v3632_v53 = vld [vmem:[#allocation44_spill] sm:$0xff] }
 0x68e   : >> { %v1411_v17 = vpop.permute.xlu1 %1410  ;;  %v1551_v48 = vsel %vm1542_vm10, %v1495_v18, %v1550_v20  ;;  %v3622_v20 = vmov %v3174_v11 }
 0x68f   : >> { %v1387_v46 = vpop.permute.xlu0 %1386  ;;  %v1499_v0 = vrot.slane %v1411_v17, %v3292_v25  ;;  %v3634_v17 = vld [vmem:[#allocation42_spill] sm:$0xff] }
 0x690   : >> { %v1467_v36 = vrot.slane %v1387_v46, %v3292_v25  ;;  %v3625_v46 = vmov %v3144_v57  ;;  %v3627_v57 = vld [vmem:[#allocation49_spill] sm:$0xff] }
 0x691   : >> { %v1552_v51 = vsel %vm1544_vm7, %v1499_v0, %v1551_v48 }
 0x692   : >> { %v1545_v2 = vsel %vm1544_vm7, %v1467_v36, %v1543_v62  ;;  %1567 = vst.msk [vmem:[%s1564_s28 + $0x8] sm:$0xff] %vm1565_vm11, %v1552_v51 }
 0x693   : >> { %1566 = vst.msk [vmem:[%s1564_s28] sm:$0xff] %vm1565_vm11, %v1545_v2  ;;  %v1435_v50 = vpop.permute.xlu0 %1434  ;;  %823 = sbr.rel (!%p3345_p13) target bundleno = 922 (0x39a), region = 119 }
 0x694   : >> { %v1531_v5 = vrot.slane %v1435_v50, %v3292_v25 }
 0x696   : >> { %v1559_v19 = vsel %vm1544_vm7, %v1531_v5, %v1558_v35 }
 0x697   : >> { %1568 = vst.msk [vmem:[%s1564_s28 + $0x10] sm:$0xff] %vm1565_vm11, %v1559_v19  ;;  %v3629_v19 = vld [vmem:[#allocation47_spill] sm:$0xff] }
 0x698   : > { %2096 = shalt.err (!%p2093_p9)
}
 0x699   : > { %s2097_s22 = scalar_lea.hbm %s3407_s11, 384  ;;  %s2101_s27 = scalar_lea.hbm %s3492_s2, 768 }
 0x69a   : > { %p2098_p0 = scmp.ne.s32.totalorder %s3407_s11, %s2097_s22  ;;  %p2102_p11 = scmp.lt.s32.totalorder %s3407_s11, %s3492_s2 }
 0x69b   : > { %p2103_p12 = scmp.lt.s32.totalorder %s2101_s27, %s2097_s22 }
 0x69c   : > { %p2099_p2 = pnand %p2098_p0, %p3635_p5 }
 0x69d   : > { %p2104_p13 = por %p2103_p12, %p2102_p11 }
 0x69e   : > { %p2100_p6 = pneg %p2099_p2 }
 0x6a0   : > { %p2105_p4 = pnand %p2104_p13, %p2100_p6 }
 0x6a2   : > { %2108 = shalt.err (!%p2105_p4)
}
 0x6a3   : > { %s2372_s9 = smov 128   ;;  %s2373_s10 = smov 256  }
 0x6a4   : > { %s2374_s6 = smov 8   ;;  %s3443_s19 = scalar_lea.hbm %s3493_s3, %s1800_s5 }
 0x6a5   : > { %1809 = dma.vmem_to_hbm [thread:$0]  (%p3635_p5), %s3410_s30, 384, %s3407_s11, %s1570_s4, %s2372_s9, %s2373_s10, %s2374_s6  }
 0x6a6   : > { %s1602_s22 = sshll.u32 %s2514_s20, 4  ;;  %s1575_s25 = scalar_lea.sflag [#allocation8], %s2489_s8  ;;  %s3446_s22 = int_to_ptr.vmem [resolvable:$true] %s1602_s22 }
 0x6a7   : > { %s2109_s26 = scalar_lea.vmem %s3446_s22, 3072  ;;  %s2375_s27 = smov [#allocation7]  }
 0x6a8   : > { %p2110_p7 = scmp.ne.s32.totalorder %s3446_s22, %s2109_s26  ;;  %s2113_s11 = sshll.u32 %s2375_s27, 4  ;;  %s2114_s11 = int_to_ptr.vmem [resolvable:$false] %s2113_s11 }
 0x6a9   : > { %s2115_s16 = scalar_lea.vmem %s2114_s11, 6144  ;;  %p2116_p1 = scmp.lt.s32.totalorder %s3446_s22, %s2114_s11 }
 0x6aa   : > { %p2111_p8 = pnand %p2110_p7, %p3635_p5  ;;  %p2117_p3 = scmp.lt.s32.totalorder %s2115_s16, %s2109_s26 }
 0x6ac   : > { %p2112_p10 = pneg %p2111_p8  ;;  %p2118_p9 = por %p2117_p3, %p2116_p1 }
 0x6ae   : > { %p2119_p0 = pnand %p2118_p9, %p2112_p10 }
 0x6b0   : > { %2122 = shalt.err (!%p2119_p0)
}
 0x6b1   : > { %s2123_s20 = scalar_lea.hbm %s3443_s19, 3072  ;;  %s2127_s30 = scalar_lea.hbm %s3493_s3, 6144 }
 0x6b2   : > { %p2124_p2 = scmp.ne.s32.totalorder %s3443_s19, %s2123_s20  ;;  %p2128_p12 = scmp.lt.s32.totalorder %s3443_s19, %s3493_s3 }
 0x6b3   : > { %p2129_p13 = scmp.lt.s32.totalorder %s2127_s30, %s2123_s20 }
 0x6b4   : > { %p2125_p6 = pnand %p2124_p2, %p3635_p5 }
 0x6b5   : > { %p2130_p4 = por %p2129_p13, %p2128_p12 }
 0x6b6   : > { %p2126_p11 = pneg %p2125_p6 }
 0x6b8   : > { %p2131_p7 = pnand %p2130_p4, %p2126_p11 }
 0x6ba   : > { %2134 = shalt.err (!%p2131_p7)
}
 0x6bb   : > { %1810 = dma.vmem_to_hbm [thread:$0]  (%p3635_p5), %s3446_s22, 3072, %s3443_s19, %s1575_s25, %s2372_s9, %s2373_s10, %s2374_s6  }
 0x6bc PF: > { %s1617_s29 = sand.u32 1, %s2257_s12   ;;  %p3636_p8 = scmp.ne.s32.totalorder %s3536_s24, 0 }
 0x6bd   : > { %p3637_p10 = scmp.ge.s32.totalorder %s2269_s15, 2  ;;  %s1618_s7 = scalar_lea.sflag [#allocation5], %s1617_s29 }
 0x6bf   : > { %p1818_p1 = pnand %p3637_p10, %p3636_p8 }
 0x6c1   : > { %p1819_p3 = pneg %p1818_p1 }
 0x6c3   : > { %2248 = dma.done.wait (%p1819_p3), %s1618_s7, 384  }
 0x6c4   : > { %2250 = vsyncadd (%p1819_p3), %s1618_s7, 4294966912  ;;  %s1627_s17 = scalar_lea.sflag [#allocation8], %s1617_s29 }
 0x6c5   : > { %2252 = dma.done.wait (%p1819_p3), %s1627_s17, 3072  }
 0x6c6   : > { %2254 = vsyncadd (%p1819_p3), %s1627_s17, 4294964224  ;;  %p20_p5 = scmp.ge.s32.totalorder %s2421_s18, 4   ;;  %s3638_s12 = smov %s2261_s13 }
 0x6c7   : > { %s3639_s13 = smov %s2265_s14  ;;  %s3640_s14 = smov %s2433_s21 }
 0x6c8   : > { %s3641_s15 = smov %s2421_s18  ;;  %22 = sbr.rel (!%p20_p5) target bundleno = 7 (0x7), region = 130 }
 0x6cd   :  { %1632 = vsyncpa [#allocation4], 1 }
 0x6ce   :  { %1634 = vsyncpa [#allocation4 + $0x1], 1 }
 0x6cf   :  { %1635 = vsyncpa [#allocation5], 1 }
 0x6d0   :  { %1637 = vsyncpa [#allocation5 + $0x1], 1 }
 0x6d1   :  { %1638 = vsyncpa [#allocation8], 1 }
 0x6d2   :  { %1640 = vsyncpa [#allocation8 + $0x1], 1 }

</bundles_post_ra>
